<compile_context>
chip_gen: v7x
topology: tpu7x:2x2x1
jax: 0.10.0
libtpu: 0.0.40
codegen_flags: <defaults>
</compile_context>

<pallas_src>
import functools

import jax
import jax.numpy as jnp
from jax.experimental import pallas as pl
from jax.experimental.pallas import tpu as pltpu


# ---------------------------------------------------------------------------
# Pallas kernel
# ---------------------------------------------------------------------------
def _decoder_kernel(x_ref, repc_ref, wslab_ref, wfrep_ref, wemb_ref, wheads_ref,
                    bslab_ref, out_ref, g0_ref, hall_ref, *, seq_len, cond_size):
    f32 = jnp.float32
    bf16 = jnp.bfloat16
    T = seq_len
    Bp, RCp = repc_ref.shape
    F = wfrep_ref.shape[1]
    Ep = wemb_ref.shape[1]
    H = wheads_ref.shape[0]
    K2 = wheads_ref.shape[1]
    H4 = 4 * H

    # ---- static views into the packed weight slab (single DMA) -------------
    wh1 = wslab_ref[0:H, :]                                   # [w_hh0 | w_ih1]   (H, 8H)
    wh2 = wslab_ref[H:2 * H, :]                               # [w_hh1 | w_ih2]   (H, 8H)
    wh3 = wslab_ref[2 * H:3 * H, 0:H4]                        # w_hh2             (H, 4H)
    wih0e = wslab_ref[3 * H:3 * H + Ep, 0:H4]                 # emb rows of w_ih0
    wih0r = wslab_ref[3 * H + Ep:3 * H + Ep + RCp, 0:H4]      # rep/cond rows of w_ih0

    b0 = bslab_ref[0:1, 0:H4]
    b1 = bslab_ref[1:2, 0:H4]
    b2 = bslab_ref[2:3, 0:H4]
    bfrep = bslab_ref[3:4, 0:F]
    bemb = bslab_ref[4:5, 0:Ep]
    bheads = bslab_ref[5:6, 0:K2]

    # ---- prologue: every time-invariant / time-parallel matmul, hoisted ----
    repc = repc_ref[...]                                                  # (Bp, RCp) f32
    x0 = jnp.dot(repc, wfrep_ref[...], preferred_element_type=f32) + bfrep  # f_rep (f32)
    cv = x0[:, F - cond_size:F - cond_size + 1]                           # shared h0/c0 fill
    h_init = jnp.broadcast_to(cv, (Bp, H))

    rep_gate = (jnp.dot(repc.astype(bf16), wih0r, preferred_element_type=f32)
                + b0)                                                     # (Bp, 4H)

    xs = jnp.concatenate([x0.astype(bf16), x_ref[...]], axis=0)           # (T*Bp, F)
    e = jnp.dot(xs, wemb_ref[...], preferred_element_type=f32) + bemb     # emb(seq)
    gin = jnp.dot(e.astype(bf16), wih0e, preferred_element_type=f32)      # (T*Bp, 4H)
    for t in range(T):                                                    # fold rep_gate + b_0
        g0_ref[t * Bp:(t + 1) * Bp, :] = gin[t * Bp:(t + 1) * Bp, :] + rep_gate

    # Hoisted bias broadcasts (no per-iteration broadcast_in_dim).
    b1b = jnp.broadcast_to(b1, (Bp, H4))
    b2b = jnp.broadcast_to(b2, (Bp, H4))

    # ---- 3-layer LSTM recurrence as a wavefront over T+2 diagonals ---------
    # At diagonal d: layer0 processes t=d, layer1 t=d-1, layer2 t=d-2; all three
    # depend only on state from diagonal d-1, so their dots issue together and
    # one stacked (3*Bp, 4H) cell() handles the activations for all of them.
    h1 = c1 = h2 = c2 = h3 = c3 = h_init
    for d in range(T + 2):
        t0 = min(d, T - 1)                                    # clamp keeps reads in-bounds
        a1 = jnp.dot(h1.astype(bf16), wh1, preferred_element_type=f32)   # (Bp, 8H)
        a2 = jnp.dot(h2.astype(bf16), wh2, preferred_element_type=f32)   # (Bp, 8H)
        a3 = jnp.dot(h3.astype(bf16), wh3, preferred_element_type=f32)   # (Bp, 4H)
        g1 = g0_ref[t0 * Bp:(t0 + 1) * Bp, :] + a1[:, 0:H4]
        g2 = a1[:, H4:2 * H4] + a2[:, 0:H4] + b1b
        g3 = a2[:, H4:2 * H4] + a3 + b2b
        g = jnp.concatenate([g1, g2, g3], axis=0)             # (3*Bp, 4H) sublane-stacked
        c = jnp.concatenate([c1, c2, c3], axis=0)             # (3*Bp, H)
        sg = jax.nn.sigmoid(g)                                # full-vreg EUP pushes, once
        th = jnp.tanh(g)
        c_new = sg[:, H:2 * H] * c + sg[:, 0:H] * th[:, 2 * H:3 * H]
        h_new = sg[:, 3 * H:4 * H] * jnp.tanh(c_new)
        if d < T:                                             # layer 0 valid at t=d
            h1, c1 = h_new[0:Bp], c_new[0:Bp]
        if 0 <= d - 1 < T:                                    # layer 1 valid at t=d-1
            h2, c2 = h_new[Bp:2 * Bp], c_new[Bp:2 * Bp]
        if 0 <= d - 2 < T:                                    # layer 2 valid at t=d-2
            h3 = h_new[2 * Bp:3 * Bp]
            c3 = c_new[2 * Bp:3 * Bp]
            hall_ref[(d - 2) * Bp:(d - 1) * Bp, :] = h3

    # ---- epilogue: both output heads fused into one matmul over T*Bp rows --
    # TODO(synk): nn.Dropout(0.5) is treated as eval-mode identity (inference forward).
    out_ref[...] = (jnp.dot(hall_ref[...].astype(bf16), wheads_ref[...],
                            preferred_element_type=f32) + bheads)


# ---------------------------------------------------------------------------
# Wrapper (jitted so pads / casts / transposes fuse and fold)
# ---------------------------------------------------------------------------
def _round_up(n, m=8):
    return ((n + m - 1) // m) * m


@functools.partial(jax.jit, static_argnums=(3,))
def decoder_forward(rep, x, params, condition_size):
    """rep: (B, 1, rep_size) f32, x: (B, T, input_size) f32 -> (tu, tv), each (B, T, time_size)."""
    f32 = jnp.float32
    bf16 = jnp.bfloat16
    B, T, F = x.shape
    C = condition_size
    R = rep.shape[2]
    H = params["w_hh0"].shape[0]
    E = params["w_emb"].shape[1]
    K = params["w_tu"].shape[1]
    RC = R + C
    RCp = _round_up(RC)
    Ep = _round_up(E)
    Bp = _round_up(B)
    H4, H8, K2 = 4 * H, 8 * H, 2 * K

    # Module glue (pure slicing / concat, no FLOPs).
    conditional = x[:, 0, F - C:]                                         # (B, C)
    rep_cat = jnp.concatenate([rep[:, 0, :], conditional], axis=1)        # (B, RC)
    repc_p = jnp.zeros((Bp, RCp), f32).at[:B, :RC].set(rep_cat)           # f32 (f_rep / init path)

    # Shifted LSTM input, steps 1..T-1 (step 0 = f_rep output, built in-kernel),
    # time-major & flattened so every kernel matmul is a plain 2-D dot.
    x_p = jnp.zeros((Bp, T, F), f32).at[:B].set(x)
    x_rest = jnp.transpose(x_p[:, :T - 1, :], (1, 0, 2)).reshape((T - 1) * Bp, F).astype(bf16)

    # ---- one bf16 weight slab (single DMA) for everything in the recurrence:
    #   rows [0,H)          [w_hh0 | w_ih1]
    #   rows [H,2H)         [w_hh1 | w_ih2]
    #   rows [2H,3H)        [w_hh2 | 0    ]
    #   rows [3H,3H+Ep)     [w_ih0 emb rows     | 0]
    #   rows [..,..+RCp)    [w_ih0 rep/cond rows| 0]
    wih0e = params["w_ih0"][:E]
    wih0r = params["w_ih0"][E:]
    wh1 = jnp.concatenate([params["w_hh0"], params["w_ih1"]], axis=1)     # (H, 8H)
    wh2 = jnp.concatenate([params["w_hh1"], params["w_ih2"]], axis=1)     # (H, 8H)
    wh3 = jnp.concatenate([params["w_hh2"], jnp.zeros((H, H4), f32)], axis=1)
    wih0e_p = jnp.zeros((Ep, H8), f32).at[:E, :H4].set(wih0e)
    wih0r_p = jnp.zeros((RCp, H8), f32).at[:RC, :H4].set(wih0r)
    wslab = jnp.concatenate([wh1, wh2, wh3, wih0e_p, wih0r_p], axis=0).astype(bf16)

    # Small prologue/epilogue weights (f_rep stays f32 for init fidelity).
    w_frep = jnp.zeros((RCp, F), f32).at[:RC].set(params["w_frep"])
    w_emb = jnp.zeros((F, Ep), f32).at[:, :E].set(params["w_emb"]).astype(bf16)
    w_heads = jnp.concatenate([params["w_tu"], params["w_tv"]], axis=1).astype(bf16)  # (H, 2K)

    # ---- one f32 bias slab (rows zero-padded to a common lane width) -------
    BW = max(H4, F, Ep, K2)

    def _row(b, n):
        return jnp.zeros((1, BW), f32).at[:, :n].set(b)

    bslab = jnp.concatenate([
        _row(params["b_0"], H4), _row(params["b_1"], H4), _row(params["b_2"], H4),
        _row(params["b_frep"], F), _row(params["b_emb"], E),
        _row(jnp.concatenate([params["b_tu"], params["b_tv"]], axis=1), K2),
    ], axis=0)

    vmem = pl.BlockSpec(memory_space=pltpu.MemorySpace.VMEM)
    args = (x_rest, repc_p, wslab, w_frep, w_emb, w_heads, bslab)
    kernel = functools.partial(_decoder_kernel, seq_len=T, cond_size=C)
    out = pl.pallas_call(
        kernel,
        out_shape=jax.ShapeDtypeStruct((T * Bp, K2), f32),
        in_specs=[vmem] * len(args),
        out_specs=vmem,
        scratch_shapes=[pltpu.VMEM((T * Bp, H4), jnp.float32),   # layer-0 gates (+rep_gate+b0)
                        pltpu.VMEM((T * Bp, H), jnp.float32)],   # top-layer h, all steps
    )(*args)

    out = out.reshape(T, Bp, K2).transpose(1, 0, 2)[:B]           # (B, T, 2K)
    return out[:, :, :K], out[:, :, K:]


# ---------------------------------------------------------------------------
# Deterministic parameter init (nn.Linear / nn.LSTM shapes, stored pre-transposed
# for x @ W; LSTM biases pre-summed b = b_ih + b_hh; gate order i,f,g,o).
# ---------------------------------------------------------------------------
def init_params(key, rep_size, input_size, emb_size, hidden_size, time_size, condition_size):
    def uni(k, shape, scale=0.1):
        return jax.random.uniform(k, shape, jnp.float32, -scale, scale)

    keys = jax.random.split(key, 17)
    H4 = 4 * hidden_size
    lstm_in = emb_size + rep_size + condition_size
    return {
        "w_frep": uni(keys[0], (rep_size + condition_size, input_size)),
        "b_frep": uni(keys[1], (1, input_size)),
        "w_emb":  uni(keys[2], (input_size, emb_size)),
        "b_emb":  uni(keys[3], (1, emb_size)),
        "w_ih0":  uni(keys[4], (lstm_in, H4)),
        "w_hh0":  uni(keys[5], (hidden_size, H4)),
        "b_0":    uni(keys[6], (1, H4)),
        "w_ih1":  uni(keys[7], (hidden_size, H4)),
        "w_hh1":  uni(keys[8], (hidden_size, H4)),
        "b_1":    uni(keys[9], (1, H4)),
        "w_ih2":  uni(keys[10], (hidden_size, H4)),
        "w_hh2":  uni(keys[11], (hidden_size, H4)),
        "b_2":    uni(keys[12], (1, H4)),
        "w_tu":   uni(keys[13], (hidden_size, time_size)),
        "b_tu":   uni(keys[14], (1, time_size)),
        "w_tv":   uni(keys[15], (hidden_size, time_size)),
        "b_tv":   uni(keys[16], (1, time_size)),
    }


# ---------------------------------------------------------------------------
# Pure-JAX f32 reference mirroring the PyTorch forward (word_drop=0, eval dropout).
# ---------------------------------------------------------------------------
def decoder_reference(rep, x, p, C):
    B, T, F = x.shape
    H = p["w_hh0"].shape[0]
    conditional = x[:, 0:1, F - C:]                                  # (B,1,C)
    rep_cat = jnp.concatenate([rep, conditional], axis=2)            # (B,1,R+C)
    origin_rep = rep_cat
    r = rep_cat @ p["w_frep"] + p["b_frep"]                          # f_rep
    xs = jnp.concatenate([r, x], axis=1)[:, :-1, :]                  # shifted seq (B,T,F)
    cv = xs[:, 0, F - C]                                             # per-batch init fill
    e = xs @ p["w_emb"] + p["b_emb"]                                 # (B,T,E)
    rep_t = jnp.broadcast_to(origin_rep, (B, T, origin_rep.shape[2]))
    z = jnp.concatenate([e, rep_t], axis=2)                          # LSTM input

    def cell(zt, h, c, wih, whh, b):
        g = zt @ wih + h @ whh + b
        i = jax.nn.sigmoid(g[:, 0:H])
        f = jax.nn.sigmoid(g[:, H:2 * H])
        gg = jnp.tanh(g[:, 2 * H:3 * H])
        o = jax.nn.sigmoid(g[:, 3 * H:4 * H])
        c = f * c + i * gg
        return o * jnp.tanh(c), c

    h1 = c1 = h2 = c2 = h3 = c3 = jnp.broadcast_to(cv[:, None], (B, H))
    ys = []
    for t in range(T):
        h1, c1 = cell(z[:, t], h1, c1, p["w_ih0"], p["w_hh0"], p["b_0"])
        h2, c2 = cell(h1, h2, c2, p["w_ih1"], p["w_hh1"], p["b_1"])
        h3, c3 = cell(h2, h3, c3, p["w_ih2"], p["w_hh2"], p["b_2"])
        ys.append(h3)
    y = jnp.stack(ys, axis=1)                                        # (B,T,H)
    return y @ p["w_tu"] + p["b_tu"], y @ p["w_tv"] + p["b_tv"]


if __name__ == "__main__":
    B, T = 2, 8
    rep_size, input_size, emb_size, hidden_size = 8, 16, 32, 32
    time_size, condition_size = 16, 4

    key = jax.random.PRNGKey(0)
    kx, kr, kp, kc = jax.random.split(key, 4)
    params = init_params(kp, rep_size, input_size, emb_size, hidden_size,
                         time_size, condition_size)

    # DFS-code-like input: features + a per-sequence conditional label in the last C slots.
    x_core = jax.random.normal(kx, (B, T, input_size - condition_size), jnp.float32)
    cond = jnp.broadcast_to(jax.random.uniform(kc, (B, 1, condition_size), jnp.float32),
                            (B, T, condition_size))
    x = jnp.concatenate([x_core, cond], axis=2)
    rep = jax.random.normal(kr, (B, 1, rep_size), jnp.float32)

    tu, tv = decoder_forward(rep, x, params, condition_size)
    jax.block_until_ready((tu, tv))

    tu_ref, tv_ref = decoder_reference(rep, x, params, condition_size)
    assert tu.shape == (B, T, time_size) and tv.shape == (B, T, time_size)
    err_tu = float(jnp.max(jnp.abs(tu - tu_ref)))
    err_tv = float(jnp.max(jnp.abs(tv - tv_ref)))
    assert err_tu < 2e-2, f"tu max abs err {err_tu}"
    assert err_tv < 2e-2, f"tv max abs err {err_tv}"

    print("KERNEL_OK")
</pallas_src>

<mosaic_0001>
module attributes {stable_mosaic.version = 11 : i64} {
  func.func @_decoder_kernel(%arg0: memref<56x16xbf16, #tpu.memory_space<vmem>>, %arg1: memref<8x16xf32, #tpu.memory_space<vmem>>, %arg2: memref<144x256xbf16, #tpu.memory_space<vmem>>, %arg3: memref<16x16xf32, #tpu.memory_space<vmem>>, %arg4: memref<16x32xbf16, #tpu.memory_space<vmem>>, %arg5: memref<32x32xbf16, #tpu.memory_space<vmem>>, %arg6: memref<6x128xf32, #tpu.memory_space<vmem>>, %arg7: memref<64x32xf32, #tpu.memory_space<vmem>>, %arg8: memref<64x128xf32, #tpu.memory_space<vmem>>, %arg9: memref<64x32xf32, #tpu.memory_space<vmem>>) attributes {dimension_semantics = [], scalar_prefetch = 0 : i64, scratch_operands = 2 : i64, tpu.core_type = #tpu.core_type<tc>} {
    %c0 = arith.constant 0 : index
    %c0_0 = arith.constant 0 : index
    %0 = vector.load %arg2[%c0, %c0_0] : memref<144x256xbf16, #tpu.memory_space<vmem>>, vector<32x256xbf16>
    %c32 = arith.constant 32 : index
    %c0_1 = arith.constant 0 : index
    %1 = vector.load %arg2[%c32, %c0_1] : memref<144x256xbf16, #tpu.memory_space<vmem>>, vector<32x256xbf16>
    %c64 = arith.constant 64 : index
    %c0_2 = arith.constant 0 : index
    %2 = vector.load %arg2[%c64, %c0_2] : memref<144x256xbf16, #tpu.memory_space<vmem>>, vector<32x128xbf16>
    %c96 = arith.constant 96 : index
    %c0_3 = arith.constant 0 : index
    %3 = vector.load %arg2[%c96, %c0_3] : memref<144x256xbf16, #tpu.memory_space<vmem>>, vector<32x128xbf16>
    %c128 = arith.constant 128 : index
    %c0_4 = arith.constant 0 : index
    %4 = vector.load %arg2[%c128, %c0_4] : memref<144x256xbf16, #tpu.memory_space<vmem>>, vector<16x128xbf16>
    %c0_5 = arith.constant 0 : index
    %c0_6 = arith.constant 0 : index
    %5 = vector.load %arg6[%c0_5, %c0_6] : memref<6x128xf32, #tpu.memory_space<vmem>>, vector<1x128xf32>
    %c1 = arith.constant 1 : index
    %c0_7 = arith.constant 0 : index
    %6 = vector.load %arg6[%c1, %c0_7] : memref<6x128xf32, #tpu.memory_space<vmem>>, vector<1x128xf32>
    %c2 = arith.constant 2 : index
    %c0_8 = arith.constant 0 : index
    %7 = vector.load %arg6[%c2, %c0_8] : memref<6x128xf32, #tpu.memory_space<vmem>>, vector<1x128xf32>
    %c3 = arith.constant 3 : index
    %c0_9 = arith.constant 0 : index
    %8 = vector.load %arg6[%c3, %c0_9] : memref<6x128xf32, #tpu.memory_space<vmem>>, vector<1x16xf32>
    %c4 = arith.constant 4 : index
    %c0_10 = arith.constant 0 : index
    %9 = vector.load %arg6[%c4, %c0_10] : memref<6x128xf32, #tpu.memory_space<vmem>>, vector<1x32xf32>
    %c5 = arith.constant 5 : index
    %c0_11 = arith.constant 0 : index
    %10 = vector.load %arg6[%c5, %c0_11] : memref<6x128xf32, #tpu.memory_space<vmem>>, vector<1x32xf32>
    %c0_12 = arith.constant 0 : index
    %c0_13 = arith.constant 0 : index
    %11 = vector.load %arg1[%c0_12, %c0_13] : memref<8x16xf32, #tpu.memory_space<vmem>>, vector<8x16xf32>
    %c0_14 = arith.constant 0 : index
    %c0_15 = arith.constant 0 : index
    %12 = vector.load %arg3[%c0_14, %c0_15] : memref<16x16xf32, #tpu.memory_space<vmem>>, vector<16x16xf32>
    %cst = arith.constant dense<0.000000e+00> : vector<8x16xf32>
    %13 = tpu.matmul %11, %12, %cst {dimension_numbers = #tpu.dot_dimension_numbers<[1], [0], [0], [1], [0, 0, 1, 1], [], []>} : vector<8x16xf32>, vector<16x16xf32>, vector<8x16xf32> -> vector<8x16xf32>
    %14 = vector.broadcast %8 : vector<1x16xf32> to vector<8x16xf32>
    %15 = arith.addf %13, %14 : vector<8x16xf32>
    %16 = vector.extract_strided_slice %15 {offsets = [0, 12], sizes = [8, 1], strides = [1, 1]} : vector<8x16xf32> to vector<8x1xf32>
    %17 = vector.shape_cast %16 : vector<8x1xf32> to vector<8x1xf32>
    %18 = vector.broadcast %17 : vector<8x1xf32> to vector<8x32xf32>
    %19 = arith.truncf %11 : vector<8x16xf32> to vector<8x16xbf16>
    %cst_16 = arith.constant dense<0.000000e+00> : vector<8x128xf32>
    %20 = tpu.matmul %19, %4, %cst_16 {dimension_numbers = #tpu.dot_dimension_numbers<[1], [0], [0], [1], [0, 0, 1, 1], [], []>} : vector<8x16xbf16>, vector<16x128xbf16>, vector<8x128xf32> -> vector<8x128xf32>
    %21 = vector.broadcast %5 : vector<1x128xf32> to vector<8x128xf32>
    %22 = arith.addf %20, %21 : vector<8x128xf32>
    %23 = arith.truncf %15 : vector<8x16xf32> to vector<8x16xbf16>
    %c0_17 = arith.constant 0 : index
    %c0_18 = arith.constant 0 : index
    %24 = vector.load %arg0[%c0_17, %c0_18] : memref<56x16xbf16, #tpu.memory_space<vmem>>, vector<56x16xbf16>
    %25 = tpu.concatenate %23, %24 in 0 : vector<8x16xbf16>, vector<56x16xbf16> -> vector<64x16xbf16>
    %c0_19 = arith.constant 0 : index
    %c0_20 = arith.constant 0 : index
    %26 = vector.load %arg4[%c0_19, %c0_20] : memref<16x32xbf16, #tpu.memory_space<vmem>>, vector<16x32xbf16>
    %cst_21 = arith.constant dense<0.000000e+00> : vector<64x32xf32>
    %27 = tpu.matmul %25, %26, %cst_21 {dimension_numbers = #tpu.dot_dimension_numbers<[1], [0], [0], [1], [0, 0, 1, 1], [], []>} : vector<64x16xbf16>, vector<16x32xbf16>, vector<64x32xf32> -> vector<64x32xf32>
    %28 = vector.broadcast %9 : vector<1x32xf32> to vector<64x32xf32>
    %29 = arith.addf %27, %28 : vector<64x32xf32>
    %30 = arith.truncf %29 : vector<64x32xf32> to vector<64x32xbf16>
    %cst_22 = arith.constant dense<0.000000e+00> : vector<64x128xf32>
    %31 = tpu.matmul %30, %3, %cst_22 {dimension_numbers = #tpu.dot_dimension_numbers<[1], [0], [0], [1], [0, 0, 1, 1], [], []>} : vector<64x32xbf16>, vector<32x128xbf16>, vector<64x128xf32> -> vector<64x128xf32>
    %32 = vector.extract_strided_slice %31 {offsets = [0, 0], sizes = [8, 128], strides = [1, 1]} : vector<64x128xf32> to vector<8x128xf32>
    %33 = arith.addf %32, %22 : vector<8x128xf32>
    %c0_23 = arith.constant 0 : index
    %c0_24 = arith.constant 0 : index
    %34 = vector.load %arg8[%c0_23, %c0_24] : memref<64x128xf32, #tpu.memory_space<vmem>>, vector<8x128xf32>
    tpu.vector_store %arg8[%c0_23, %c0_24], %33 {strides = array<i32>} : memref<64x128xf32, #tpu.memory_space<vmem>>, vector<8x128xf32>,
    %35 = vector.extract_strided_slice %31 {offsets = [8, 0], sizes = [8, 128], strides = [1, 1]} : vector<64x128xf32> to vector<8x128xf32>
    %36 = arith.addf %35, %22 : vector<8x128xf32>
    %c8 = arith.constant 8 : index
    %c0_25 = arith.constant 0 : index
    %37 = vector.load %arg8[%c8, %c0_25] : memref<64x128xf32, #tpu.memory_space<vmem>>, vector<8x128xf32>
    tpu.vector_store %arg8[%c8, %c0_25], %36 {strides = array<i32>} : memref<64x128xf32, #tpu.memory_space<vmem>>, vector<8x128xf32>,
    %38 = vector.extract_strided_slice %31 {offsets = [16, 0], sizes = [8, 128], strides = [1, 1]} : vector<64x128xf32> to vector<8x128xf32>
    %39 = arith.addf %38, %22 : vector<8x128xf32>
    %c16 = arith.constant 16 : index
    %c0_26 = arith.constant 0 : index
    %40 = vector.load %arg8[%c16, %c0_26] : memref<64x128xf32, #tpu.memory_space<vmem>>, vector<8x128xf32>
    tpu.vector_store %arg8[%c16, %c0_26], %39 {strides = array<i32>} : memref<64x128xf32, #tpu.memory_space<vmem>>, vector<8x128xf32>,
    %41 = vector.extract_strided_slice %31 {offsets = [24, 0], sizes = [8, 128], strides = [1, 1]} : vector<64x128xf32> to vector<8x128xf32>
    %42 = arith.addf %41, %22 : vector<8x128xf32>
    %c24 = arith.constant 24 : index
    %c0_27 = arith.constant 0 : index
    %43 = vector.load %arg8[%c24, %c0_27] : memref<64x128xf32, #tpu.memory_space<vmem>>, vector<8x128xf32>
    tpu.vector_store %arg8[%c24, %c0_27], %42 {strides = array<i32>} : memref<64x128xf32, #tpu.memory_space<vmem>>, vector<8x128xf32>,
    %44 = vector.extract_strided_slice %31 {offsets = [32, 0], sizes = [8, 128], strides = [1, 1]} : vector<64x128xf32> to vector<8x128xf32>
    %45 = arith.addf %44, %22 : vector<8x128xf32>
    %c32_28 = arith.constant 32 : index
    %c0_29 = arith.constant 0 : index
    %46 = vector.load %arg8[%c32_28, %c0_29] : memref<64x128xf32, #tpu.memory_space<vmem>>, vector<8x128xf32>
    tpu.vector_store %arg8[%c32_28, %c0_29], %45 {strides = array<i32>} : memref<64x128xf32, #tpu.memory_space<vmem>>, vector<8x128xf32>,
    %47 = vector.extract_strided_slice %31 {offsets = [40, 0], sizes = [8, 128], strides = [1, 1]} : vector<64x128xf32> to vector<8x128xf32>
    %48 = arith.addf %47, %22 : vector<8x128xf32>
    %c40 = arith.constant 40 : index
    %c0_30 = arith.constant 0 : index
    %49 = vector.load %arg8[%c40, %c0_30] : memref<64x128xf32, #tpu.memory_space<vmem>>, vector<8x128xf32>
    tpu.vector_store %arg8[%c40, %c0_30], %48 {strides = array<i32>} : memref<64x128xf32, #tpu.memory_space<vmem>>, vector<8x128xf32>,
    %50 = vector.extract_strided_slice %31 {offsets = [48, 0], sizes = [8, 128], strides = [1, 1]} : vector<64x128xf32> to vector<8x128xf32>
    %51 = arith.addf %50, %22 : vector<8x128xf32>
    %c48 = arith.constant 48 : index
    %c0_31 = arith.constant 0 : index
    %52 = vector.load %arg8[%c48, %c0_31] : memref<64x128xf32, #tpu.memory_space<vmem>>, vector<8x128xf32>
    tpu.vector_store %arg8[%c48, %c0_31], %51 {strides = array<i32>} : memref<64x128xf32, #tpu.memory_space<vmem>>, vector<8x128xf32>,
    %53 = vector.extract_strided_slice %31 {offsets = [56, 0], sizes = [8, 128], strides = [1, 1]} : vector<64x128xf32> to vector<8x128xf32>
    %54 = arith.addf %53, %22 : vector<8x128xf32>
    %c56 = arith.constant 56 : index
    %c0_32 = arith.constant 0 : index
    %55 = vector.load %arg8[%c56, %c0_32] : memref<64x128xf32, #tpu.memory_space<vmem>>, vector<8x128xf32>
    tpu.vector_store %arg8[%c56, %c0_32], %54 {strides = array<i32>} : memref<64x128xf32, #tpu.memory_space<vmem>>, vector<8x128xf32>,
    %56 = vector.shape_cast %6 : vector<1x128xf32> to vector<1x128xf32>
    %57 = vector.broadcast %56 : vector<1x128xf32> to vector<8x128xf32>
    %58 = vector.shape_cast %7 : vector<1x128xf32> to vector<1x128xf32>
    %59 = vector.broadcast %58 : vector<1x128xf32> to vector<8x128xf32>
    %60 = arith.truncf %18 : vector<8x32xf32> to vector<8x32xbf16>
    %cst_33 = arith.constant dense<0.000000e+00> : vector<8x256xf32>
    %61 = tpu.matmul %60, %0, %cst_33 {dimension_numbers = #tpu.dot_dimension_numbers<[1], [0], [0], [1], [0, 0, 1, 1], [], []>} : vector<8x32xbf16>, vector<32x256xbf16>, vector<8x256xf32> -> vector<8x256xf32>
    %62 = arith.truncf %18 : vector<8x32xf32> to vector<8x32xbf16>
    %cst_34 = arith.constant dense<0.000000e+00> : vector<8x256xf32>
    %63 = tpu.matmul %62, %1, %cst_34 {dimension_numbers = #tpu.dot_dimension_numbers<[1], [0], [0], [1], [0, 0, 1, 1], [], []>} : vector<8x32xbf16>, vector<32x256xbf16>, vector<8x256xf32> -> vector<8x256xf32>
    %64 = arith.truncf %18 : vector<8x32xf32> to vector<8x32xbf16>
    %cst_35 = arith.constant dense<0.000000e+00> : vector<8x128xf32>
    %65 = tpu.matmul %64, %2, %cst_35 {dimension_numbers = #tpu.dot_dimension_numbers<[1], [0], [0], [1], [0, 0, 1, 1], [], []>} : vector<8x32xbf16>, vector<32x128xbf16>, vector<8x128xf32> -> vector<8x128xf32>
    %c0_36 = arith.constant 0 : index
    %c0_37 = arith.constant 0 : index
    %66 = vector.load %arg8[%c0_36, %c0_37] : memref<64x128xf32, #tpu.memory_space<vmem>>, vector<8x128xf32>
    %67 = vector.extract_strided_slice %61 {offsets = [0, 0], sizes = [8, 128], strides = [1, 1]} : vector<8x256xf32> to vector<8x128xf32>
    %68 = arith.addf %66, %67 : vector<8x128xf32>
    %69 = vector.extract_strided_slice %61 {offsets = [0, 128], sizes = [8, 128], strides = [1, 1]} : vector<8x256xf32> to vector<8x128xf32>
    %70 = vector.extract_strided_slice %63 {offsets = [0, 0], sizes = [8, 128], strides = [1, 1]} : vector<8x256xf32> to vector<8x128xf32>
    %71 = arith.addf %69, %70 : vector<8x128xf32>
    %72 = arith.addf %71, %57 : vector<8x128xf32>
    %73 = vector.extract_strided_slice %63 {offsets = [0, 128], sizes = [8, 128], strides = [1, 1]} : vector<8x256xf32> to vector<8x128xf32>
    %74 = arith.addf %73, %65 : vector<8x128xf32>
    %75 = arith.addf %74, %59 : vector<8x128xf32>
    %76 = tpu.concatenate %68, %72, %75 in 0 : vector<8x128xf32>, vector<8x128xf32>, vector<8x128xf32> -> vector<24x128xf32>
    %77 = tpu.concatenate %18, %18, %18 in 0 : vector<8x32xf32>, vector<8x32xf32>, vector<8x32xf32> -> vector<24x32xf32>
    %78 = arith.negf %76 : vector<24x128xf32>
    %79 = math.exp %78 : vector<24x128xf32>
    %cst_38 = arith.constant 1.000000e+00 : f32
    %80 = vector.broadcast %cst_38 : f32 to vector<24x128xf32>
    %81 = arith.addf %80, %79 : vector<24x128xf32>
    %82 = arith.divf %80, %81 : vector<24x128xf32>
    %83 = math.tanh %76 : vector<24x128xf32>
    %84 = vector.extract_strided_slice %82 {offsets = [0, 32], sizes = [24, 32], strides = [1, 1]} : vector<24x128xf32> to vector<24x32xf32>
    %85 = arith.mulf %84, %77 : vector<24x32xf32>
    %86 = vector.extract_strided_slice %82 {offsets = [0, 0], sizes = [24, 32], strides = [1, 1]} : vector<24x128xf32> to vector<24x32xf32>
    %87 = vector.extract_strided_slice %83 {offsets = [0, 64], sizes = [24, 32], strides = [1, 1]} : vector<24x128xf32> to vector<24x32xf32>
    %88 = arith.mulf %86, %87 : vector<24x32xf32>
    %89 = arith.addf %85, %88 : vector<24x32xf32>
    %90 = vector.extract_strided_slice %82 {offsets = [0, 96], sizes = [24, 32], strides = [1, 1]} : vector<24x128xf32> to vector<24x32xf32>
    %91 = math.tanh %89 : vector<24x32xf32>
    %92 = arith.mulf %90, %91 : vector<24x32xf32>
    %93 = vector.extract_strided_slice %92 {offsets = [0, 0], sizes = [8, 32], strides = [1, 1]} : vector<24x32xf32> to vector<8x32xf32>
    %94 = vector.extract_strided_slice %89 {offsets = [0, 0], sizes = [8, 32], strides = [1, 1]} : vector<24x32xf32> to vector<8x32xf32>
    %95 = arith.truncf %93 : vector<8x32xf32> to vector<8x32xbf16>
    %cst_39 = arith.constant dense<0.000000e+00> : vector<8x256xf32>
    %96 = tpu.matmul %95, %0, %cst_39 {dimension_numbers = #tpu.dot_dimension_numbers<[1], [0], [0], [1], [0, 0, 1, 1], [], []>} : vector<8x32xbf16>, vector<32x256xbf16>, vector<8x256xf32> -> vector<8x256xf32>
    %97 = arith.truncf %18 : vector<8x32xf32> to vector<8x32xbf16>
    %cst_40 = arith.constant dense<0.000000e+00> : vector<8x256xf32>
    %98 = tpu.matmul %97, %1, %cst_40 {dimension_numbers = #tpu.dot_dimension_numbers<[1], [0], [0], [1], [0, 0, 1, 1], [], []>} : vector<8x32xbf16>, vector<32x256xbf16>, vector<8x256xf32> -> vector<8x256xf32>
    %99 = arith.truncf %18 : vector<8x32xf32> to vector<8x32xbf16>
    %cst_41 = arith.constant dense<0.000000e+00> : vector<8x128xf32>
    %100 = tpu.matmul %99, %2, %cst_41 {dimension_numbers = #tpu.dot_dimension_numbers<[1], [0], [0], [1], [0, 0, 1, 1], [], []>} : vector<8x32xbf16>, vector<32x128xbf16>, vector<8x128xf32> -> vector<8x128xf32>
    %c8_42 = arith.constant 8 : index
    %c0_43 = arith.constant 0 : index
    %101 = vector.load %arg8[%c8_42, %c0_43] : memref<64x128xf32, #tpu.memory_space<vmem>>, vector<8x128xf32>
    %102 = vector.extract_strided_slice %96 {offsets = [0, 0], sizes = [8, 128], strides = [1, 1]} : vector<8x256xf32> to vector<8x128xf32>
    %103 = arith.addf %101, %102 : vector<8x128xf32>
    %104 = vector.extract_strided_slice %96 {offsets = [0, 128], sizes = [8, 128], strides = [1, 1]} : vector<8x256xf32> to vector<8x128xf32>
    %105 = vector.extract_strided_slice %98 {offsets = [0, 0], sizes = [8, 128], strides = [1, 1]} : vector<8x256xf32> to vector<8x128xf32>
    %106 = arith.addf %104, %105 : vector<8x128xf32>
    %107 = arith.addf %106, %57 : vector<8x128xf32>
    %108 = vector.extract_strided_slice %98 {offsets = [0, 128], sizes = [8, 128], strides = [1, 1]} : vector<8x256xf32> to vector<8x128xf32>
    %109 = arith.addf %108, %100 : vector<8x128xf32>
    %110 = arith.addf %109, %59 : vector<8x128xf32>
    %111 = tpu.concatenate %103, %107, %110 in 0 : vector<8x128xf32>, vector<8x128xf32>, vector<8x128xf32> -> vector<24x128xf32>
    %112 = tpu.concatenate %94, %18, %18 in 0 : vector<8x32xf32>, vector<8x32xf32>, vector<8x32xf32> -> vector<24x32xf32>
    %113 = arith.negf %111 : vector<24x128xf32>
    %114 = math.exp %113 : vector<24x128xf32>
    %cst_44 = arith.constant 1.000000e+00 : f32
    %115 = vector.broadcast %cst_44 : f32 to vector<24x128xf32>
    %116 = arith.addf %115, %114 : vector<24x128xf32>
    %117 = arith.divf %115, %116 : vector<24x128xf32>
    %118 = math.tanh %111 : vector<24x128xf32>
    %119 = vector.extract_strided_slice %117 {offsets = [0, 32], sizes = [24, 32], strides = [1, 1]} : vector<24x128xf32> to vector<24x32xf32>
    %120 = arith.mulf %119, %112 : vector<24x32xf32>
    %121 = vector.extract_strided_slice %117 {offsets = [0, 0], sizes = [24, 32], strides = [1, 1]} : vector<24x128xf32> to vector<24x32xf32>
    %122 = vector.extract_strided_slice %118 {offsets = [0, 64], sizes = [24, 32], strides = [1, 1]} : vector<24x128xf32> to vector<24x32xf32>
    %123 = arith.mulf %121, %122 : vector<24x32xf32>
    %124 = arith.addf %120, %123 : vector<24x32xf32>
    %125 = vector.extract_strided_slice %117 {offsets = [0, 96], sizes = [24, 32], strides = [1, 1]} : vector<24x128xf32> to vector<24x32xf32>
    %126 = math.tanh %124 : vector<24x32xf32>
    %127 = arith.mulf %125, %126 : vector<24x32xf32>
    %128 = vector.extract_strided_slice %127 {offsets = [0, 0], sizes = [8, 32], strides = [1, 1]} : vector<24x32xf32> to vector<8x32xf32>
    %129 = vector.extract_strided_slice %124 {offsets = [0, 0], sizes = [8, 32], strides = [1, 1]} : vector<24x32xf32> to vector<8x32xf32>
    %130 = vector.extract_strided_slice %127 {offsets = [8, 0], sizes = [8, 32], strides = [1, 1]} : vector<24x32xf32> to vector<8x32xf32>
    %131 = vector.extract_strided_slice %124 {offsets = [8, 0], sizes = [8, 32], strides = [1, 1]} : vector<24x32xf32> to vector<8x32xf32>
    %132 = arith.truncf %128 : vector<8x32xf32> to vector<8x32xbf16>
    %cst_45 = arith.constant dense<0.000000e+00> : vector<8x256xf32>
    %133 = tpu.matmul %132, %0, %cst_45 {dimension_numbers = #tpu.dot_dimension_numbers<[1], [0], [0], [1], [0, 0, 1, 1], [], []>} : vector<8x32xbf16>, vector<32x256xbf16>, vector<8x256xf32> -> vector<8x256xf32>
    %134 = arith.truncf %130 : vector<8x32xf32> to vector<8x32xbf16>
    %cst_46 = arith.constant dense<0.000000e+00> : vector<8x256xf32>
    %135 = tpu.matmul %134, %1, %cst_46 {dimension_numbers = #tpu.dot_dimension_numbers<[1], [0], [0], [1], [0, 0, 1, 1], [], []>} : vector<8x32xbf16>, vector<32x256xbf16>, vector<8x256xf32> -> vector<8x256xf32>
    %136 = arith.truncf %18 : vector<8x32xf32> to vector<8x32xbf16>
    %cst_47 = arith.constant dense<0.000000e+00> : vector<8x128xf32>
    %137 = tpu.matmul %136, %2, %cst_47 {dimension_numbers = #tpu.dot_dimension_numbers<[1], [0], [0], [1], [0, 0, 1, 1], [], []>} : vector<8x32xbf16>, vector<32x128xbf16>, vector<8x128xf32> -> vector<8x128xf32>
    %c16_48 = arith.constant 16 : index
    %c0_49 = arith.constant 0 : index
    %138 = vector.load %arg8[%c16_48, %c0_49] : memref<64x128xf32, #tpu.memory_space<vmem>>, vector<8x128xf32>
    %139 = vector.extract_strided_slice %133 {offsets = [0, 0], sizes = [8, 128], strides = [1, 1]} : vector<8x256xf32> to vector<8x128xf32>
    %140 = arith.addf %138, %139 : vector<8x128xf32>
    %141 = vector.extract_strided_slice %133 {offsets = [0, 128], sizes = [8, 128], strides = [1, 1]} : vector<8x256xf32> to vector<8x128xf32>
    %142 = vector.extract_strided_slice %135 {offsets = [0, 0], sizes = [8, 128], strides = [1, 1]} : vector<8x256xf32> to vector<8x128xf32>
    %143 = arith.addf %141, %142 : vector<8x128xf32>
    %144 = arith.addf %143, %57 : vector<8x128xf32>
    %145 = vector.extract_strided_slice %135 {offsets = [0, 128], sizes = [8, 128], strides = [1, 1]} : vector<8x256xf32> to vector<8x128xf32>
    %146 = arith.addf %145, %137 : vector<8x128xf32>
    %147 = arith.addf %146, %59 : vector<8x128xf32>
    %148 = tpu.concatenate %140, %144, %147 in 0 : vector<8x128xf32>, vector<8x128xf32>, vector<8x128xf32> -> vector<24x128xf32>
    %149 = tpu.concatenate %129, %131, %18 in 0 : vector<8x32xf32>, vector<8x32xf32>, vector<8x32xf32> -> vector<24x32xf32>
    %150 = arith.negf %148 : vector<24x128xf32>
    %151 = math.exp %150 : vector<24x128xf32>
    %cst_50 = arith.constant 1.000000e+00 : f32
    %152 = vector.broadcast %cst_50 : f32 to vector<24x128xf32>
    %153 = arith.addf %152, %151 : vector<24x128xf32>
    %154 = arith.divf %152, %153 : vector<24x128xf32>
    %155 = math.tanh %148 : vector<24x128xf32>
    %156 = vector.extract_strided_slice %154 {offsets = [0, 32], sizes = [24, 32], strides = [1, 1]} : vector<24x128xf32> to vector<24x32xf32>
    %157 = arith.mulf %156, %149 : vector<24x32xf32>
    %158 = vector.extract_strided_slice %154 {offsets = [0, 0], sizes = [24, 32], strides = [1, 1]} : vector<24x128xf32> to vector<24x32xf32>
    %159 = vector.extract_strided_slice %155 {offsets = [0, 64], sizes = [24, 32], strides = [1, 1]} : vector<24x128xf32> to vector<24x32xf32>
    %160 = arith.mulf %158, %159 : vector<24x32xf32>
    %161 = arith.addf %157, %160 : vector<24x32xf32>
    %162 = vector.extract_strided_slice %154 {offsets = [0, 96], sizes = [24, 32], strides = [1, 1]} : vector<24x128xf32> to vector<24x32xf32>
    %163 = math.tanh %161 : vector<24x32xf32>
    %164 = arith.mulf %162, %163 : vector<24x32xf32>
    %165 = vector.extract_strided_slice %164 {offsets = [0, 0], sizes = [8, 32], strides = [1, 1]} : vector<24x32xf32> to vector<8x32xf32>
    %166 = vector.extract_strided_slice %161 {offsets = [0, 0], sizes = [8, 32], strides = [1, 1]} : vector<24x32xf32> to vector<8x32xf32>
    %167 = vector.extract_strided_slice %164 {offsets = [8, 0], sizes = [8, 32], strides = [1, 1]} : vector<24x32xf32> to vector<8x32xf32>
    %168 = vector.extract_strided_slice %161 {offsets = [8, 0], sizes = [8, 32], strides = [1, 1]} : vector<24x32xf32> to vector<8x32xf32>
    %169 = vector.extract_strided_slice %164 {offsets = [16, 0], sizes = [8, 32], strides = [1, 1]} : vector<24x32xf32> to vector<8x32xf32>
    %170 = vector.extract_strided_slice %161 {offsets = [16, 0], sizes = [8, 32], strides = [1, 1]} : vector<24x32xf32> to vector<8x32xf32>
    %c0_51 = arith.constant 0 : index
    %c0_52 = arith.constant 0 : index
    %171 = vector.load %arg9[%c0_51, %c0_52] : memref<64x32xf32, #tpu.memory_space<vmem>>, vector<8x32xf32>
    tpu.vector_store %arg9[%c0_51, %c0_52], %169 {strides = array<i32>} : memref<64x32xf32, #tpu.memory_space<vmem>>, vector<8x32xf32>,
    %172 = arith.truncf %165 : vector<8x32xf32> to vector<8x32xbf16>
    %cst_53 = arith.constant dense<0.000000e+00> : vector<8x256xf32>
    %173 = tpu.matmul %172, %0, %cst_53 {dimension_numbers = #tpu.dot_dimension_numbers<[1], [0], [0], [1], [0, 0, 1, 1], [], []>} : vector<8x32xbf16>, vector<32x256xbf16>, vector<8x256xf32> -> vector<8x256xf32>
    %174 = arith.truncf %167 : vector<8x32xf32> to vector<8x32xbf16>
    %cst_54 = arith.constant dense<0.000000e+00> : vector<8x256xf32>
    %175 = tpu.matmul %174, %1, %cst_54 {dimension_numbers = #tpu.dot_dimension_numbers<[1], [0], [0], [1], [0, 0, 1, 1], [], []>} : vector<8x32xbf16>, vector<32x256xbf16>, vector<8x256xf32> -> vector<8x256xf32>
    %176 = arith.truncf %169 : vector<8x32xf32> to vector<8x32xbf16>
    %cst_55 = arith.constant dense<0.000000e+00> : vector<8x128xf32>
    %177 = tpu.matmul %176, %2, %cst_55 {dimension_numbers = #tpu.dot_dimension_numbers<[1], [0], [0], [1], [0, 0, 1, 1], [], []>} : vector<8x32xbf16>, vector<32x128xbf16>, vector<8x128xf32> -> vector<8x128xf32>
    %c24_56 = arith.constant 24 : index
    %c0_57 = arith.constant 0 : index
    %178 = vector.load %arg8[%c24_56, %c0_57] : memref<64x128xf32, #tpu.memory_space<vmem>>, vector<8x128xf32>
    %179 = vector.extract_strided_slice %173 {offsets = [0, 0], sizes = [8, 128], strides = [1, 1]} : vector<8x256xf32> to vector<8x128xf32>
    %180 = arith.addf %178, %179 : vector<8x128xf32>
    %181 = vector.extract_strided_slice %173 {offsets = [0, 128], sizes = [8, 128], strides = [1, 1]} : vector<8x256xf32> to vector<8x128xf32>
    %182 = vector.extract_strided_slice %175 {offsets = [0, 0], sizes = [8, 128], strides = [1, 1]} : vector<8x256xf32> to vector<8x128xf32>
    %183 = arith.addf %181, %182 : vector<8x128xf32>
    %184 = arith.addf %183, %57 : vector<8x128xf32>
    %185 = vector.extract_strided_slice %175 {offsets = [0, 128], sizes = [8, 128], strides = [1, 1]} : vector<8x256xf32> to vector<8x128xf32>
    %186 = arith.addf %185, %177 : vector<8x128xf32>
    %187 = arith.addf %186, %59 : vector<8x128xf32>
    %188 = tpu.concatenate %180, %184, %187 in 0 : vector<8x128xf32>, vector<8x128xf32>, vector<8x128xf32> -> vector<24x128xf32>
    %189 = tpu.concatenate %166, %168, %170 in 0 : vector<8x32xf32>, vector<8x32xf32>, vector<8x32xf32> -> vector<24x32xf32>
    %190 = arith.negf %188 : vector<24x128xf32>
    %191 = math.exp %190 : vector<24x128xf32>
    %cst_58 = arith.constant 1.000000e+00 : f32
    %192 = vector.broadcast %cst_58 : f32 to vector<24x128xf32>
    %193 = arith.addf %192, %191 : vector<24x128xf32>
    %194 = arith.divf %192, %193 : vector<24x128xf32>
    %195 = math.tanh %188 : vector<24x128xf32>
    %196 = vector.extract_strided_slice %194 {offsets = [0, 32], sizes = [24, 32], strides = [1, 1]} : vector<24x128xf32> to vector<24x32xf32>
    %197 = arith.mulf %196, %189 : vector<24x32xf32>
    %198 = vector.extract_strided_slice %194 {offsets = [0, 0], sizes = [24, 32], strides = [1, 1]} : vector<24x128xf32> to vector<24x32xf32>
    %199 = vector.extract_strided_slice %195 {offsets = [0, 64], sizes = [24, 32], strides = [1, 1]} : vector<24x128xf32> to vector<24x32xf32>
    %200 = arith.mulf %198, %199 : vector<24x32xf32>
    %201 = arith.addf %197, %200 : vector<24x32xf32>
    %202 = vector.extract_strided_slice %194 {offsets = [0, 96], sizes = [24, 32], strides = [1, 1]} : vector<24x128xf32> to vector<24x32xf32>
    %203 = math.tanh %201 : vector<24x32xf32>
    %204 = arith.mulf %202, %203 : vector<24x32xf32>
    %205 = vector.extract_strided_slice %204 {offsets = [0, 0], sizes = [8, 32], strides = [1, 1]} : vector<24x32xf32> to vector<8x32xf32>
    %206 = vector.extract_strided_slice %201 {offsets = [0, 0], sizes = [8, 32], strides = [1, 1]} : vector<24x32xf32> to vector<8x32xf32>
    %207 = vector.extract_strided_slice %204 {offsets = [8, 0], sizes = [8, 32], strides = [1, 1]} : vector<24x32xf32> to vector<8x32xf32>
    %208 = vector.extract_strided_slice %201 {offsets = [8, 0], sizes = [8, 32], strides = [1, 1]} : vector<24x32xf32> to vector<8x32xf32>
    %209 = vector.extract_strided_slice %204 {offsets = [16, 0], sizes = [8, 32], strides = [1, 1]} : vector<24x32xf32> to vector<8x32xf32>
    %210 = vector.extract_strided_slice %201 {offsets = [16, 0], sizes = [8, 32], strides = [1, 1]} : vector<24x32xf32> to vector<8x32xf32>
    %c8_59 = arith.constant 8 : index
    %c0_60 = arith.constant 0 : index
    %211 = vector.load %arg9[%c8_59, %c0_60] : memref<64x32xf32, #tpu.memory_space<vmem>>, vector<8x32xf32>
    tpu.vector_store %arg9[%c8_59, %c0_60], %209 {strides = array<i32>} : memref<64x32xf32, #tpu.memory_space<vmem>>, vector<8x32xf32>,
    %212 = arith.truncf %205 : vector<8x32xf32> to vector<8x32xbf16>
    %cst_61 = arith.constant dense<0.000000e+00> : vector<8x256xf32>
    %213 = tpu.matmul %212, %0, %cst_61 {dimension_numbers = #tpu.dot_dimension_numbers<[1], [0], [0], [1], [0, 0, 1, 1], [], []>} : vector<8x32xbf16>, vector<32x256xbf16>, vector<8x256xf32> -> vector<8x256xf32>
    %214 = arith.truncf %207 : vector<8x32xf32> to vector<8x32xbf16>
    %cst_62 = arith.constant dense<0.000000e+00> : vector<8x256xf32>
    %215 = tpu.matmul %214, %1, %cst_62 {dimension_numbers = #tpu.dot_dimension_numbers<[1], [0], [0], [1], [0, 0, 1, 1], [], []>} : vector<8x32xbf16>, vector<32x256xbf16>, vector<8x256xf32> -> vector<8x256xf32>
    %216 = arith.truncf %209 : vector<8x32xf32> to vector<8x32xbf16>
    %cst_63 = arith.constant dense<0.000000e+00> : vector<8x128xf32>
    %217 = tpu.matmul %216, %2, %cst_63 {dimension_numbers = #tpu.dot_dimension_numbers<[1], [0], [0], [1], [0, 0, 1, 1], [], []>} : vector<8x32xbf16>, vector<32x128xbf16>, vector<8x128xf32> -> vector<8x128xf32>
    %c32_64 = arith.constant 32 : index
    %c0_65 = arith.constant 0 : index
    %218 = vector.load %arg8[%c32_64, %c0_65] : memref<64x128xf32, #tpu.memory_space<vmem>>, vector<8x128xf32>
    %219 = vector.extract_strided_slice %213 {offsets = [0, 0], sizes = [8, 128], strides = [1, 1]} : vector<8x256xf32> to vector<8x128xf32>
    %220 = arith.addf %218, %219 : vector<8x128xf32>
    %221 = vector.extract_strided_slice %213 {offsets = [0, 128], sizes = [8, 128], strides = [1, 1]} : vector<8x256xf32> to vector<8x128xf32>
    %222 = vector.extract_strided_slice %215 {offsets = [0, 0], sizes = [8, 128], strides = [1, 1]} : vector<8x256xf32> to vector<8x128xf32>
    %223 = arith.addf %221, %222 : vector<8x128xf32>
    %224 = arith.addf %223, %57 : vector<8x128xf32>
    %225 = vector.extract_strided_slice %215 {offsets = [0, 128], sizes = [8, 128], strides = [1, 1]} : vector<8x256xf32> to vector<8x128xf32>
    %226 = arith.addf %225, %217 : vector<8x128xf32>
    %227 = arith.addf %226, %59 : vector<8x128xf32>
    %228 = tpu.concatenate %220, %224, %227 in 0 : vector<8x128xf32>, vector<8x128xf32>, vector<8x128xf32> -> vector<24x128xf32>
    %229 = tpu.concatenate %206, %208, %210 in 0 : vector<8x32xf32>, vector<8x32xf32>, vector<8x32xf32> -> vector<24x32xf32>
    %230 = arith.negf %228 : vector<24x128xf32>
    %231 = math.exp %230 : vector<24x128xf32>
    %cst_66 = arith.constant 1.000000e+00 : f32
    %232 = vector.broadcast %cst_66 : f32 to vector<24x128xf32>
    %233 = arith.addf %232, %231 : vector<24x128xf32>
    %234 = arith.divf %232, %233 : vector<24x128xf32>
    %235 = math.tanh %228 : vector<24x128xf32>
    %236 = vector.extract_strided_slice %234 {offsets = [0, 32], sizes = [24, 32], strides = [1, 1]} : vector<24x128xf32> to vector<24x32xf32>
    %237 = arith.mulf %236, %229 : vector<24x32xf32>
    %238 = vector.extract_strided_slice %234 {offsets = [0, 0], sizes = [24, 32], strides = [1, 1]} : vector<24x128xf32> to vector<24x32xf32>
    %239 = vector.extract_strided_slice %235 {offsets = [0, 64], sizes = [24, 32], strides = [1, 1]} : vector<24x128xf32> to vector<24x32xf32>
    %240 = arith.mulf %238, %239 : vector<24x32xf32>
    %241 = arith.addf %237, %240 : vector<24x32xf32>
    %242 = vector.extract_strided_slice %234 {offsets = [0, 96], sizes = [24, 32], strides = [1, 1]} : vector<24x128xf32> to vector<24x32xf32>
    %243 = math.tanh %241 : vector<24x32xf32>
    %244 = arith.mulf %242, %243 : vector<24x32xf32>
    %245 = vector.extract_strided_slice %244 {offsets = [0, 0], sizes = [8, 32], strides = [1, 1]} : vector<24x32xf32> to vector<8x32xf32>
    %246 = vector.extract_strided_slice %241 {offsets = [0, 0], sizes = [8, 32], strides = [1, 1]} : vector<24x32xf32> to vector<8x32xf32>
    %247 = vector.extract_strided_slice %244 {offsets = [8, 0], sizes = [8, 32], strides = [1, 1]} : vector<24x32xf32> to vector<8x32xf32>
    %248 = vector.extract_strided_slice %241 {offsets = [8, 0], sizes = [8, 32], strides = [1, 1]} : vector<24x32xf32> to vector<8x32xf32>
    %249 = vector.extract_strided_slice %244 {offsets = [16, 0], sizes = [8, 32], strides = [1, 1]} : vector<24x32xf32> to vector<8x32xf32>
    %250 = vector.extract_strided_slice %241 {offsets = [16, 0], sizes = [8, 32], strides = [1, 1]} : vector<24x32xf32> to vector<8x32xf32>
    %c16_67 = arith.constant 16 : index
    %c0_68 = arith.constant 0 : index
    %251 = vector.load %arg9[%c16_67, %c0_68] : memref<64x32xf32, #tpu.memory_space<vmem>>, vector<8x32xf32>
    tpu.vector_store %arg9[%c16_67, %c0_68], %249 {strides = array<i32>} : memref<64x32xf32, #tpu.memory_space<vmem>>, vector<8x32xf32>,
    %252 = arith.truncf %245 : vector<8x32xf32> to vector<8x32xbf16>
    %cst_69 = arith.constant dense<0.000000e+00> : vector<8x256xf32>
    %253 = tpu.matmul %252, %0, %cst_69 {dimension_numbers = #tpu.dot_dimension_numbers<[1], [0], [0], [1], [0, 0, 1, 1], [], []>} : vector<8x32xbf16>, vector<32x256xbf16>, vector<8x256xf32> -> vector<8x256xf32>
    %254 = arith.truncf %247 : vector<8x32xf32> to vector<8x32xbf16>
    %cst_70 = arith.constant dense<0.000000e+00> : vector<8x256xf32>
    %255 = tpu.matmul %254, %1, %cst_70 {dimension_numbers = #tpu.dot_dimension_numbers<[1], [0], [0], [1], [0, 0, 1, 1], [], []>} : vector<8x32xbf16>, vector<32x256xbf16>, vector<8x256xf32> -> vector<8x256xf32>
    %256 = arith.truncf %249 : vector<8x32xf32> to vector<8x32xbf16>
    %cst_71 = arith.constant dense<0.000000e+00> : vector<8x128xf32>
    %257 = tpu.matmul %256, %2, %cst_71 {dimension_numbers = #tpu.dot_dimension_numbers<[1], [0], [0], [1], [0, 0, 1, 1], [], []>} : vector<8x32xbf16>, vector<32x128xbf16>, vector<8x128xf32> -> vector<8x128xf32>
    %c40_72 = arith.constant 40 : index
    %c0_73 = arith.constant 0 : index
    %258 = vector.load %arg8[%c40_72, %c0_73] : memref<64x128xf32, #tpu.memory_space<vmem>>, vector<8x128xf32>
    %259 = vector.extract_strided_slice %253 {offsets = [0, 0], sizes = [8, 128], strides = [1, 1]} : vector<8x256xf32> to vector<8x128xf32>
    %260 = arith.addf %258, %259 : vector<8x128xf32>
    %261 = vector.extract_strided_slice %253 {offsets = [0, 128], sizes = [8, 128], strides = [1, 1]} : vector<8x256xf32> to vector<8x128xf32>
    %262 = vector.extract_strided_slice %255 {offsets = [0, 0], sizes = [8, 128], strides = [1, 1]} : vector<8x256xf32> to vector<8x128xf32>
    %263 = arith.addf %261, %262 : vector<8x128xf32>
    %264 = arith.addf %263, %57 : vector<8x128xf32>
    %265 = vector.extract_strided_slice %255 {offsets = [0, 128], sizes = [8, 128], strides = [1, 1]} : vector<8x256xf32> to vector<8x128xf32>
    %266 = arith.addf %265, %257 : vector<8x128xf32>
    %267 = arith.addf %266, %59 : vector<8x128xf32>
    %268 = tpu.concatenate %260, %264, %267 in 0 : vector<8x128xf32>, vector<8x128xf32>, vector<8x128xf32> -> vector<24x128xf32>
    %269 = tpu.concatenate %246, %248, %250 in 0 : vector<8x32xf32>, vector<8x32xf32>, vector<8x32xf32> -> vector<24x32xf32>
    %270 = arith.negf %268 : vector<24x128xf32>
    %271 = math.exp %270 : vector<24x128xf32>
    %cst_74 = arith.constant 1.000000e+00 : f32
    %272 = vector.broadcast %cst_74 : f32 to vector<24x128xf32>
    %273 = arith.addf %272, %271 : vector<24x128xf32>
    %274 = arith.divf %272, %273 : vector<24x128xf32>
    %275 = math.tanh %268 : vector<24x128xf32>
    %276 = vector.extract_strided_slice %274 {offsets = [0, 32], sizes = [24, 32], strides = [1, 1]} : vector<24x128xf32> to vector<24x32xf32>
    %277 = arith.mulf %276, %269 : vector<24x32xf32>
    %278 = vector.extract_strided_slice %274 {offsets = [0, 0], sizes = [24, 32], strides = [1, 1]} : vector<24x128xf32> to vector<24x32xf32>
    %279 = vector.extract_strided_slice %275 {offsets = [0, 64], sizes = [24, 32], strides = [1, 1]} : vector<24x128xf32> to vector<24x32xf32>
    %280 = arith.mulf %278, %279 : vector<24x32xf32>
    %281 = arith.addf %277, %280 : vector<24x32xf32>
    %282 = vector.extract_strided_slice %274 {offsets = [0, 96], sizes = [24, 32], strides = [1, 1]} : vector<24x128xf32> to vector<24x32xf32>
    %283 = math.tanh %281 : vector<24x32xf32>
    %284 = arith.mulf %282, %283 : vector<24x32xf32>
    %285 = vector.extract_strided_slice %284 {offsets = [0, 0], sizes = [8, 32], strides = [1, 1]} : vector<24x32xf32> to vector<8x32xf32>
    %286 = vector.extract_strided_slice %281 {offsets = [0, 0], sizes = [8, 32], strides = [1, 1]} : vector<24x32xf32> to vector<8x32xf32>
    %287 = vector.extract_strided_slice %284 {offsets = [8, 0], sizes = [8, 32], strides = [1, 1]} : vector<24x32xf32> to vector<8x32xf32>
    %288 = vector.extract_strided_slice %281 {offsets = [8, 0], sizes = [8, 32], strides = [1, 1]} : vector<24x32xf32> to vector<8x32xf32>
    %289 = vector.extract_strided_slice %284 {offsets = [16, 0], sizes = [8, 32], strides = [1, 1]} : vector<24x32xf32> to vector<8x32xf32>
    %290 = vector.extract_strided_slice %281 {offsets = [16, 0], sizes = [8, 32], strides = [1, 1]} : vector<24x32xf32> to vector<8x32xf32>
    %c24_75 = arith.constant 24 : index
    %c0_76 = arith.constant 0 : index
    %291 = vector.load %arg9[%c24_75, %c0_76] : memref<64x32xf32, #tpu.memory_space<vmem>>, vector<8x32xf32>
    tpu.vector_store %arg9[%c24_75, %c0_76], %289 {strides = array<i32>} : memref<64x32xf32, #tpu.memory_space<vmem>>, vector<8x32xf32>,
    %292 = arith.truncf %285 : vector<8x32xf32> to vector<8x32xbf16>
    %cst_77 = arith.constant dense<0.000000e+00> : vector<8x256xf32>
    %293 = tpu.matmul %292, %0, %cst_77 {dimension_numbers = #tpu.dot_dimension_numbers<[1], [0], [0], [1], [0, 0, 1, 1], [], []>} : vector<8x32xbf16>, vector<32x256xbf16>, vector<8x256xf32> -> vector<8x256xf32>
    %294 = arith.truncf %287 : vector<8x32xf32> to vector<8x32xbf16>
    %cst_78 = arith.constant dense<0.000000e+00> : vector<8x256xf32>
    %295 = tpu.matmul %294, %1, %cst_78 {dimension_numbers = #tpu.dot_dimension_numbers<[1], [0], [0], [1], [0, 0, 1, 1], [], []>} : vector<8x32xbf16>, vector<32x256xbf16>, vector<8x256xf32> -> vector<8x256xf32>
    %296 = arith.truncf %289 : vector<8x32xf32> to vector<8x32xbf16>
    %cst_79 = arith.constant dense<0.000000e+00> : vector<8x128xf32>
    %297 = tpu.matmul %296, %2, %cst_79 {dimension_numbers = #tpu.dot_dimension_numbers<[1], [0], [0], [1], [0, 0, 1, 1], [], []>} : vector<8x32xbf16>, vector<32x128xbf16>, vector<8x128xf32> -> vector<8x128xf32>
    %c48_80 = arith.constant 48 : index
    %c0_81 = arith.constant 0 : index
    %298 = vector.load %arg8[%c48_80, %c0_81] : memref<64x128xf32, #tpu.memory_space<vmem>>, vector<8x128xf32>
    %299 = vector.extract_strided_slice %293 {offsets = [0, 0], sizes = [8, 128], strides = [1, 1]} : vector<8x256xf32> to vector<8x128xf32>
    %300 = arith.addf %298, %299 : vector<8x128xf32>
    %301 = vector.extract_strided_slice %293 {offsets = [0, 128], sizes = [8, 128], strides = [1, 1]} : vector<8x256xf32> to vector<8x128xf32>
    %302 = vector.extract_strided_slice %295 {offsets = [0, 0], sizes = [8, 128], strides = [1, 1]} : vector<8x256xf32> to vector<8x128xf32>
    %303 = arith.addf %301, %302 : vector<8x128xf32>
    %304 = arith.addf %303, %57 : vector<8x128xf32>
    %305 = vector.extract_strided_slice %295 {offsets = [0, 128], sizes = [8, 128], strides = [1, 1]} : vector<8x256xf32> to vector<8x128xf32>
    %306 = arith.addf %305, %297 : vector<8x128xf32>
    %307 = arith.addf %306, %59 : vector<8x128xf32>
    %308 = tpu.concatenate %300, %304, %307 in 0 : vector<8x128xf32>, vector<8x128xf32>, vector<8x128xf32> -> vector<24x128xf32>
    %309 = tpu.concatenate %286, %288, %290 in 0 : vector<8x32xf32>, vector<8x32xf32>, vector<8x32xf32> -> vector<24x32xf32>
    %310 = arith.negf %308 : vector<24x128xf32>
    %311 = math.exp %310 : vector<24x128xf32>
    %cst_82 = arith.constant 1.000000e+00 : f32
    %312 = vector.broadcast %cst_82 : f32 to vector<24x128xf32>
    %313 = arith.addf %312, %311 : vector<24x128xf32>
    %314 = arith.divf %312, %313 : vector<24x128xf32>
    %315 = math.tanh %308 : vector<24x128xf32>
    %316 = vector.extract_strided_slice %314 {offsets = [0, 32], sizes = [24, 32], strides = [1, 1]} : vector<24x128xf32> to vector<24x32xf32>
    %317 = arith.mulf %316, %309 : vector<24x32xf32>
    %318 = vector.extract_strided_slice %314 {offsets = [0, 0], sizes = [24, 32], strides = [1, 1]} : vector<24x128xf32> to vector<24x32xf32>
    %319 = vector.extract_strided_slice %315 {offsets = [0, 64], sizes = [24, 32], strides = [1, 1]} : vector<24x128xf32> to vector<24x32xf32>
    %320 = arith.mulf %318, %319 : vector<24x32xf32>
    %321 = arith.addf %317, %320 : vector<24x32xf32>
    %322 = vector.extract_strided_slice %314 {offsets = [0, 96], sizes = [24, 32], strides = [1, 1]} : vector<24x128xf32> to vector<24x32xf32>
    %323 = math.tanh %321 : vector<24x32xf32>
    %324 = arith.mulf %322, %323 : vector<24x32xf32>
    %325 = vector.extract_strided_slice %324 {offsets = [0, 0], sizes = [8, 32], strides = [1, 1]} : vector<24x32xf32> to vector<8x32xf32>
    %326 = vector.extract_strided_slice %321 {offsets = [0, 0], sizes = [8, 32], strides = [1, 1]} : vector<24x32xf32> to vector<8x32xf32>
    %327 = vector.extract_strided_slice %324 {offsets = [8, 0], sizes = [8, 32], strides = [1, 1]} : vector<24x32xf32> to vector<8x32xf32>
    %328 = vector.extract_strided_slice %321 {offsets = [8, 0], sizes = [8, 32], strides = [1, 1]} : vector<24x32xf32> to vector<8x32xf32>
    %329 = vector.extract_strided_slice %324 {offsets = [16, 0], sizes = [8, 32], strides = [1, 1]} : vector<24x32xf32> to vector<8x32xf32>
    %330 = vector.extract_strided_slice %321 {offsets = [16, 0], sizes = [8, 32], strides = [1, 1]} : vector<24x32xf32> to vector<8x32xf32>
    %c32_83 = arith.constant 32 : index
    %c0_84 = arith.constant 0 : index
    %331 = vector.load %arg9[%c32_83, %c0_84] : memref<64x32xf32, #tpu.memory_space<vmem>>, vector<8x32xf32>
    tpu.vector_store %arg9[%c32_83, %c0_84], %329 {strides = array<i32>} : memref<64x32xf32, #tpu.memory_space<vmem>>, vector<8x32xf32>,
    %332 = arith.truncf %325 : vector<8x32xf32> to vector<8x32xbf16>
    %cst_85 = arith.constant dense<0.000000e+00> : vector<8x256xf32>
    %333 = tpu.matmul %332, %0, %cst_85 {dimension_numbers = #tpu.dot_dimension_numbers<[1], [0], [0], [1], [0, 0, 1, 1], [], []>} : vector<8x32xbf16>, vector<32x256xbf16>, vector<8x256xf32> -> vector<8x256xf32>
    %334 = arith.truncf %327 : vector<8x32xf32> to vector<8x32xbf16>
    %cst_86 = arith.constant dense<0.000000e+00> : vector<8x256xf32>
    %335 = tpu.matmul %334, %1, %cst_86 {dimension_numbers = #tpu.dot_dimension_numbers<[1], [0], [0], [1], [0, 0, 1, 1], [], []>} : vector<8x32xbf16>, vector<32x256xbf16>, vector<8x256xf32> -> vector<8x256xf32>
    %336 = arith.truncf %329 : vector<8x32xf32> to vector<8x32xbf16>
    %cst_87 = arith.constant dense<0.000000e+00> : vector<8x128xf32>
    %337 = tpu.matmul %336, %2, %cst_87 {dimension_numbers = #tpu.dot_dimension_numbers<[1], [0], [0], [1], [0, 0, 1, 1], [], []>} : vector<8x32xbf16>, vector<32x128xbf16>, vector<8x128xf32> -> vector<8x128xf32>
    %c56_88 = arith.constant 56 : index
    %c0_89 = arith.constant 0 : index
    %338 = vector.load %arg8[%c56_88, %c0_89] : memref<64x128xf32, #tpu.memory_space<vmem>>, vector<8x128xf32>
    %339 = vector.extract_strided_slice %333 {offsets = [0, 0], sizes = [8, 128], strides = [1, 1]} : vector<8x256xf32> to vector<8x128xf32>
    %340 = arith.addf %338, %339 : vector<8x128xf32>
    %341 = vector.extract_strided_slice %333 {offsets = [0, 128], sizes = [8, 128], strides = [1, 1]} : vector<8x256xf32> to vector<8x128xf32>
    %342 = vector.extract_strided_slice %335 {offsets = [0, 0], sizes = [8, 128], strides = [1, 1]} : vector<8x256xf32> to vector<8x128xf32>
    %343 = arith.addf %341, %342 : vector<8x128xf32>
    %344 = arith.addf %343, %57 : vector<8x128xf32>
    %345 = vector.extract_strided_slice %335 {offsets = [0, 128], sizes = [8, 128], strides = [1, 1]} : vector<8x256xf32> to vector<8x128xf32>
    %346 = arith.addf %345, %337 : vector<8x128xf32>
    %347 = arith.addf %346, %59 : vector<8x128xf32>
    %348 = tpu.concatenate %340, %344, %347 in 0 : vector<8x128xf32>, vector<8x128xf32>, vector<8x128xf32> -> vector<24x128xf32>
    %349 = tpu.concatenate %326, %328, %330 in 0 : vector<8x32xf32>, vector<8x32xf32>, vector<8x32xf32> -> vector<24x32xf32>
    %350 = arith.negf %348 : vector<24x128xf32>
    %351 = math.exp %350 : vector<24x128xf32>
    %cst_90 = arith.constant 1.000000e+00 : f32
    %352 = vector.broadcast %cst_90 : f32 to vector<24x128xf32>
    %353 = arith.addf %352, %351 : vector<24x128xf32>
    %354 = arith.divf %352, %353 : vector<24x128xf32>
    %355 = math.tanh %348 : vector<24x128xf32>
    %356 = vector.extract_strided_slice %354 {offsets = [0, 32], sizes = [24, 32], strides = [1, 1]} : vector<24x128xf32> to vector<24x32xf32>
    %357 = arith.mulf %356, %349 : vector<24x32xf32>
    %358 = vector.extract_strided_slice %354 {offsets = [0, 0], sizes = [24, 32], strides = [1, 1]} : vector<24x128xf32> to vector<24x32xf32>
    %359 = vector.extract_strided_slice %355 {offsets = [0, 64], sizes = [24, 32], strides = [1, 1]} : vector<24x128xf32> to vector<24x32xf32>
    %360 = arith.mulf %358, %359 : vector<24x32xf32>
    %361 = arith.addf %357, %360 : vector<24x32xf32>
    %362 = vector.extract_strided_slice %354 {offsets = [0, 96], sizes = [24, 32], strides = [1, 1]} : vector<24x128xf32> to vector<24x32xf32>
    %363 = math.tanh %361 : vector<24x32xf32>
    %364 = arith.mulf %362, %363 : vector<24x32xf32>
    %365 = vector.extract_strided_slice %364 {offsets = [0, 0], sizes = [8, 32], strides = [1, 1]} : vector<24x32xf32> to vector<8x32xf32>
    %366 = vector.extract_strided_slice %361 {offsets = [0, 0], sizes = [8, 32], strides = [1, 1]} : vector<24x32xf32> to vector<8x32xf32>
    %367 = vector.extract_strided_slice %364 {offsets = [8, 0], sizes = [8, 32], strides = [1, 1]} : vector<24x32xf32> to vector<8x32xf32>
    %368 = vector.extract_strided_slice %361 {offsets = [8, 0], sizes = [8, 32], strides = [1, 1]} : vector<24x32xf32> to vector<8x32xf32>
    %369 = vector.extract_strided_slice %364 {offsets = [16, 0], sizes = [8, 32], strides = [1, 1]} : vector<24x32xf32> to vector<8x32xf32>
    %370 = vector.extract_strided_slice %361 {offsets = [16, 0], sizes = [8, 32], strides = [1, 1]} : vector<24x32xf32> to vector<8x32xf32>
    %c40_91 = arith.constant 40 : index
    %c0_92 = arith.constant 0 : index
    %371 = vector.load %arg9[%c40_91, %c0_92] : memref<64x32xf32, #tpu.memory_space<vmem>>, vector<8x32xf32>
    tpu.vector_store %arg9[%c40_91, %c0_92], %369 {strides = array<i32>} : memref<64x32xf32, #tpu.memory_space<vmem>>, vector<8x32xf32>,
    %372 = arith.truncf %365 : vector<8x32xf32> to vector<8x32xbf16>
    %cst_93 = arith.constant dense<0.000000e+00> : vector<8x256xf32>
    %373 = tpu.matmul %372, %0, %cst_93 {dimension_numbers = #tpu.dot_dimension_numbers<[1], [0], [0], [1], [0, 0, 1, 1], [], []>} : vector<8x32xbf16>, vector<32x256xbf16>, vector<8x256xf32> -> vector<8x256xf32>
    %374 = arith.truncf %367 : vector<8x32xf32> to vector<8x32xbf16>
    %cst_94 = arith.constant dense<0.000000e+00> : vector<8x256xf32>
    %375 = tpu.matmul %374, %1, %cst_94 {dimension_numbers = #tpu.dot_dimension_numbers<[1], [0], [0], [1], [0, 0, 1, 1], [], []>} : vector<8x32xbf16>, vector<32x256xbf16>, vector<8x256xf32> -> vector<8x256xf32>
    %376 = arith.truncf %369 : vector<8x32xf32> to vector<8x32xbf16>
    %cst_95 = arith.constant dense<0.000000e+00> : vector<8x128xf32>
    %377 = tpu.matmul %376, %2, %cst_95 {dimension_numbers = #tpu.dot_dimension_numbers<[1], [0], [0], [1], [0, 0, 1, 1], [], []>} : vector<8x32xbf16>, vector<32x128xbf16>, vector<8x128xf32> -> vector<8x128xf32>
    %c56_96 = arith.constant 56 : index
    %c0_97 = arith.constant 0 : index
    %378 = vector.load %arg8[%c56_96, %c0_97] : memref<64x128xf32, #tpu.memory_space<vmem>>, vector<8x128xf32>
    %379 = vector.extract_strided_slice %373 {offsets = [0, 0], sizes = [8, 128], strides = [1, 1]} : vector<8x256xf32> to vector<8x128xf32>
    %380 = arith.addf %378, %379 : vector<8x128xf32>
    %381 = vector.extract_strided_slice %373 {offsets = [0, 128], sizes = [8, 128], strides = [1, 1]} : vector<8x256xf32> to vector<8x128xf32>
    %382 = vector.extract_strided_slice %375 {offsets = [0, 0], sizes = [8, 128], strides = [1, 1]} : vector<8x256xf32> to vector<8x128xf32>
    %383 = arith.addf %381, %382 : vector<8x128xf32>
    %384 = arith.addf %383, %57 : vector<8x128xf32>
    %385 = vector.extract_strided_slice %375 {offsets = [0, 128], sizes = [8, 128], strides = [1, 1]} : vector<8x256xf32> to vector<8x128xf32>
    %386 = arith.addf %385, %377 : vector<8x128xf32>
    %387 = arith.addf %386, %59 : vector<8x128xf32>
    %388 = tpu.concatenate %380, %384, %387 in 0 : vector<8x128xf32>, vector<8x128xf32>, vector<8x128xf32> -> vector<24x128xf32>
    %389 = tpu.concatenate %366, %368, %370 in 0 : vector<8x32xf32>, vector<8x32xf32>, vector<8x32xf32> -> vector<24x32xf32>
    %390 = arith.negf %388 : vector<24x128xf32>
    %391 = math.exp %390 : vector<24x128xf32>
    %cst_98 = arith.constant 1.000000e+00 : f32
    %392 = vector.broadcast %cst_98 : f32 to vector<24x128xf32>
    %393 = arith.addf %392, %391 : vector<24x128xf32>
    %394 = arith.divf %392, %393 : vector<24x128xf32>
    %395 = math.tanh %388 : vector<24x128xf32>
    %396 = vector.extract_strided_slice %394 {offsets = [0, 32], sizes = [24, 32], strides = [1, 1]} : vector<24x128xf32> to vector<24x32xf32>
    %397 = arith.mulf %396, %389 : vector<24x32xf32>
    %398 = vector.extract_strided_slice %394 {offsets = [0, 0], sizes = [24, 32], strides = [1, 1]} : vector<24x128xf32> to vector<24x32xf32>
    %399 = vector.extract_strided_slice %395 {offsets = [0, 64], sizes = [24, 32], strides = [1, 1]} : vector<24x128xf32> to vector<24x32xf32>
    %400 = arith.mulf %398, %399 : vector<24x32xf32>
    %401 = arith.addf %397, %400 : vector<24x32xf32>
    %402 = vector.extract_strided_slice %394 {offsets = [0, 96], sizes = [24, 32], strides = [1, 1]} : vector<24x128xf32> to vector<24x32xf32>
    %403 = math.tanh %401 : vector<24x32xf32>
    %404 = arith.mulf %402, %403 : vector<24x32xf32>
    %405 = vector.extract_strided_slice %404 {offsets = [8, 0], sizes = [8, 32], strides = [1, 1]} : vector<24x32xf32> to vector<8x32xf32>
    %406 = vector.extract_strided_slice %401 {offsets = [8, 0], sizes = [8, 32], strides = [1, 1]} : vector<24x32xf32> to vector<8x32xf32>
    %407 = vector.extract_strided_slice %404 {offsets = [16, 0], sizes = [8, 32], strides = [1, 1]} : vector<24x32xf32> to vector<8x32xf32>
    %408 = vector.extract_strided_slice %401 {offsets = [16, 0], sizes = [8, 32], strides = [1, 1]} : vector<24x32xf32> to vector<8x32xf32>
    %c48_99 = arith.constant 48 : index
    %c0_100 = arith.constant 0 : index
    %409 = vector.load %arg9[%c48_99, %c0_100] : memref<64x32xf32, #tpu.memory_space<vmem>>, vector<8x32xf32>
    tpu.vector_store %arg9[%c48_99, %c0_100], %407 {strides = array<i32>} : memref<64x32xf32, #tpu.memory_space<vmem>>, vector<8x32xf32>,
    %410 = arith.truncf %365 : vector<8x32xf32> to vector<8x32xbf16>
    %cst_101 = arith.constant dense<0.000000e+00> : vector<8x256xf32>
    %411 = tpu.matmul %410, %0, %cst_101 {dimension_numbers = #tpu.dot_dimension_numbers<[1], [0], [0], [1], [0, 0, 1, 1], [], []>} : vector<8x32xbf16>, vector<32x256xbf16>, vector<8x256xf32> -> vector<8x256xf32>
    %412 = arith.truncf %405 : vector<8x32xf32> to vector<8x32xbf16>
    %cst_102 = arith.constant dense<0.000000e+00> : vector<8x256xf32>
    %413 = tpu.matmul %412, %1, %cst_102 {dimension_numbers = #tpu.dot_dimension_numbers<[1], [0], [0], [1], [0, 0, 1, 1], [], []>} : vector<8x32xbf16>, vector<32x256xbf16>, vector<8x256xf32> -> vector<8x256xf32>
    %414 = arith.truncf %407 : vector<8x32xf32> to vector<8x32xbf16>
    %cst_103 = arith.constant dense<0.000000e+00> : vector<8x128xf32>
    %415 = tpu.matmul %414, %2, %cst_103 {dimension_numbers = #tpu.dot_dimension_numbers<[1], [0], [0], [1], [0, 0, 1, 1], [], []>} : vector<8x32xbf16>, vector<32x128xbf16>, vector<8x128xf32> -> vector<8x128xf32>
    %c56_104 = arith.constant 56 : index
    %c0_105 = arith.constant 0 : index
    %416 = vector.load %arg8[%c56_104, %c0_105] : memref<64x128xf32, #tpu.memory_space<vmem>>, vector<8x128xf32>
    %417 = vector.extract_strided_slice %411 {offsets = [0, 0], sizes = [8, 128], strides = [1, 1]} : vector<8x256xf32> to vector<8x128xf32>
    %418 = arith.addf %416, %417 : vector<8x128xf32>
    %419 = vector.extract_strided_slice %411 {offsets = [0, 128], sizes = [8, 128], strides = [1, 1]} : vector<8x256xf32> to vector<8x128xf32>
    %420 = vector.extract_strided_slice %413 {offsets = [0, 0], sizes = [8, 128], strides = [1, 1]} : vector<8x256xf32> to vector<8x128xf32>
    %421 = arith.addf %419, %420 : vector<8x128xf32>
    %422 = arith.addf %421, %57 : vector<8x128xf32>
    %423 = vector.extract_strided_slice %413 {offsets = [0, 128], sizes = [8, 128], strides = [1, 1]} : vector<8x256xf32> to vector<8x128xf32>
    %424 = arith.addf %423, %415 : vector<8x128xf32>
    %425 = arith.addf %424, %59 : vector<8x128xf32>
    %426 = tpu.concatenate %418, %422, %425 in 0 : vector<8x128xf32>, vector<8x128xf32>, vector<8x128xf32> -> vector<24x128xf32>
    %427 = tpu.concatenate %366, %406, %408 in 0 : vector<8x32xf32>, vector<8x32xf32>, vector<8x32xf32> -> vector<24x32xf32>
    %428 = arith.negf %426 : vector<24x128xf32>
    %429 = math.exp %428 : vector<24x128xf32>
    %cst_106 = arith.constant 1.000000e+00 : f32
    %430 = vector.broadcast %cst_106 : f32 to vector<24x128xf32>
    %431 = arith.addf %430, %429 : vector<24x128xf32>
    %432 = arith.divf %430, %431 : vector<24x128xf32>
    %433 = math.tanh %426 : vector<24x128xf32>
    %434 = vector.extract_strided_slice %432 {offsets = [0, 32], sizes = [24, 32], strides = [1, 1]} : vector<24x128xf32> to vector<24x32xf32>
    %435 = arith.mulf %434, %427 : vector<24x32xf32>
    %436 = vector.extract_strided_slice %432 {offsets = [0, 0], sizes = [24, 32], strides = [1, 1]} : vector<24x128xf32> to vector<24x32xf32>
    %437 = vector.extract_strided_slice %433 {offsets = [0, 64], sizes = [24, 32], strides = [1, 1]} : vector<24x128xf32> to vector<24x32xf32>
    %438 = arith.mulf %436, %437 : vector<24x32xf32>
    %439 = arith.addf %435, %438 : vector<24x32xf32>
    %440 = vector.extract_strided_slice %432 {offsets = [0, 96], sizes = [24, 32], strides = [1, 1]} : vector<24x128xf32> to vector<24x32xf32>
    %441 = math.tanh %439 : vector<24x32xf32>
    %442 = arith.mulf %440, %441 : vector<24x32xf32>
    %443 = vector.extract_strided_slice %442 {offsets = [16, 0], sizes = [8, 32], strides = [1, 1]} : vector<24x32xf32> to vector<8x32xf32>
    %c56_107 = arith.constant 56 : index
    %c0_108 = arith.constant 0 : index
    %444 = vector.load %arg9[%c56_107, %c0_108] : memref<64x32xf32, #tpu.memory_space<vmem>>, vector<8x32xf32>
    tpu.vector_store %arg9[%c56_107, %c0_108], %443 {strides = array<i32>} : memref<64x32xf32, #tpu.memory_space<vmem>>, vector<8x32xf32>,
    %c0_109 = arith.constant 0 : index
    %c0_110 = arith.constant 0 : index
    %445 = vector.load %arg9[%c0_109, %c0_110] : memref<64x32xf32, #tpu.memory_space<vmem>>, vector<64x32xf32>
    %446 = arith.truncf %445 : vector<64x32xf32> to vector<64x32xbf16>
    %c0_111 = arith.constant 0 : index
    %c0_112 = arith.constant 0 : index
    %447 = vector.load %arg5[%c0_111, %c0_112] : memref<32x32xbf16, #tpu.memory_space<vmem>>, vector<32x32xbf16>
    %cst_113 = arith.constant dense<0.000000e+00> : vector<64x32xf32>
    %448 = tpu.matmul %446, %447, %cst_113 {dimension_numbers = #tpu.dot_dimension_numbers<[1], [0], [0], [1], [0, 0, 1, 1], [], []>} : vector<64x32xbf16>, vector<32x32xbf16>, vector<64x32xf32> -> vector<64x32xf32>
    %449 = vector.broadcast %10 : vector<1x32xf32> to vector<64x32xf32>
    %450 = arith.addf %448, %449 : vector<64x32xf32>
    %c0_114 = arith.constant 0 : index
    %c0_115 = arith.constant 0 : index
    %451 = vector.load %arg7[%c0_114, %c0_115] : memref<64x32xf32, #tpu.memory_space<vmem>>, vector<64x32xf32>
    tpu.vector_store %arg7[%c0_114, %c0_115], %450 {strides = array<i32>} : memref<64x32xf32, #tpu.memory_space<vmem>>, vector<64x32xf32>,
    return
  }
}

</mosaic_0001>

<bundles_post_ra>
// kernel: decoder_forward.1
= control target key start
LH: loop header
LB: loop body
LE: loop exit
PB: predicated region body
PF: predicated region fallthrough
CT: control target
= control target key end

     0   :  { %v2972_v0 = vmov 0.0|0.0   ;;  %vm2973_vm0 = vmmov 0   ;;  %v2974_v3 = vmov 0.0   ;;  %vm58_vm1 = vcmask 130048   ;;  %s2977_s9 = smov 32   ;;  %s2978_s20 = smov 64   ;;  %s3667_s3 = inlined_call_operand.vmem [shape: f32[16,16], index: 3, kind: input, shape index: {}]   ;;  %s3668_s1 = inlined_call_operand.vmem [shape: f32[8,16], index: 1, kind: input, shape index: {}]   ;;  %s3669_s4 = inlined_call_operand.vmem [shape: bf16[16,32], index: 4, kind: input, shape index: {}]   ;;  %s3670_s0 = inlined_call_operand.vmem [shape: bf16[56,16], index: 0, kind: input, shape index: {}]   ;;  %s3671_s2 = inlined_call_operand.vmem [shape: bf16[144,256], index: 2, kind: input, shape index: {}]   ;;  %s3672_s6 = inlined_call_operand.vmem [shape: f32[6,128], index: 6, kind: input, shape index: {}]   ;;  %s3673_s5 = inlined_call_operand.vmem [shape: bf16[32,32], index: 5, kind: input, shape index: {}]   ;;  %s3674_s7 = inlined_call_operand.vmem [shape: f32[64,32], index: 7, kind: output, shape index: {}]  }
   0x1   :  { %2733 = vmatprep.subr.bf16.mxu1 %v2972_v0  ;;  %v52_v1 = vld [vmem:[%s3667_s3] sm:$0xff]  ;;  %v53_v2 = vld [vmem:[%s3667_s3 + $0x8] sm:$0xff]  ;;  %2626 = vmatprep.mubr.msk.f32.mxu1 %vm2973_vm0, %v2974_v3  ;;  %v2975_v7 = vmov 12   ;;  %vm217_vm2 = vcmask 1043456   ;;  %v3063_v19 = vld [vmem:[%s3671_s2 + $0x14] ss:$8 sps:$4 sm:$0xff]  }
   0x2   :  { %v2734_v4 = vpack.c.bf16 %v53_v2, %v52_v1  ;;  %v51_v5 = vld [vmem:[%s3668_s1] sm:$0xff]  ;;  %2743 = vset.pattern.permute.xlu0 %v2975_v7  ;;  %v2747_v16 = vld [vmem:[%s3670_s0 + $0xc] sm:$0xff]   ;;  %v2748_v21 = vld [vmem:[%s3670_s0 + $0x14] sm:$0xff]   ;;  %v2976_v24 = vmov 0   ;;  %vm325_vm3 = vcmask 261120  }
   0x3   :  { %v2744_v6 = vld [vmem:[%s3669_s4] sm:$0xff]   ;;  %v3072_v20 = vld [vmem:[%s3671_s2 + $0x10] ss:$8 sps:$4 sm:$0xff]   ;;  %v137_v23 = vpack.c.bf16 %v51_v5, %v51_v5  ;;  %v3138_v44 = vld [vmem:[%s3671_s2 + $0x34] ss:$8 sps:$4 sm:$0xff]  }
   0x4   :  { %2735 = vmatpush3.bf16.msra.mxu1 %v2734_v4  ;;  %2635 = vmatprep.subr.bf16.mxu0 %v2744_v6  ;;  %v3040_v8 = vld [vmem:[%s3671_s2 + $0x4] ss:$8 sps:$4 sm:$0xff]   ;;  %v2486_v9 = vld [vmem:[%s3672_s6 + $0x3] ss:$0 sm:$0xff]  ;;  %v2745_v13 = vld [vmem:[%s3670_s0] ss:$0 sps:$4 sm:$0xff]  }
   0x5   :  { %2629 = vmatprep.subr.bf16.mxu1 %v2974_v3  ;;  %2636 = vmatpush3.bf16.msra.mxu0 %v2744_v6  ;;  %v2746_v15 = vld [vmem:[%s3670_s0 + $0x4] sm:$0xff]   ;;  %v2759_v26 = vld [vmem:[%s3671_s2 + $0x70] ss:$8 sps:$4 sm:$0xff]  }
   0x6   :  { %451 = vmatprep.subr.bf16.mxu0 %v3040_v8  ;;  %v3058_v17 = vld [vmem:[%s3671_s2] ss:$8 sps:$4 sm:$0xff]   ;;  %v3095_v27 = vld [vmem:[%s3671_s2 + $0x24] ss:$8 sps:$4 sm:$0xff]   ;;  %v3114_v31 = vld [vmem:[%s3671_s2 + $0x50] ss:$8 sps:$4 sm:$0xff]  }
   0x7   :  { %2627 = vmatmul.mubr.msk.f32.vlgmr.msra.gmra.mrb[0].mxu1 %vm58_vm1, %v51_v5  ;;  %v2757_v22 = vld [vmem:[%s3671_s2 + $0x80] ss:$8 sps:$4 sm:$0xff]   ;;  %v2495_v33 = vld [vmem:[%s3672_s6 + $0x4] ss:$0 sm:$0xff]  ;;  %v3146_v50 = vld [vmem:[%s3671_s2 + $0x30] ss:$8 sps:$4 sm:$0xff]  }
   0x8   :  { %2631 = vmatprep.mubr.msk.bf16.mxu1 %vm2973_vm0, %v2974_v3  ;;  %2630 = vmatpush3.bf16.msra.mxu1 %v2757_v22  ;;  %v2758_v25 = vld [vmem:[%s3671_s2 + $0x60] ss:$8 sps:$4 sm:$0xff]  }
   0x9   :  { %2645 = vmatprep.subr.bf16.mxu1 %v2758_v25  ;;  %v3103_v29 = vld [vmem:[%s3671_s2 + $0x40] ss:$8 sps:$4 sm:$0xff]  }
   0xa   :  { %v3133_v43 = vld [vmem:[%s3671_s2 + $0x20] ss:$8 sps:$4 sm:$0xff]  }
   0xb   :  { %2632 = vmatmul.mubr.msk.bf16.vlgmr.msra.gmra.mrb[4].mxu1 %vm58_vm1, %v137_v23  ;;  %v2488_v5 = vld [vmem:[%s3672_s6] ss:$0 sm:$0xff] }
   0xc   :  { %2646 = vmatpush3.bf16.msra.mxu1 %v2758_v25 }
   0xd   :  { %2647 = vmatprep.subr.bf16.mxu1 %v2759_v26 }
  0x10   :  { %2648 = vmatpush3.bf16.msra.mxu1 %v2759_v26 }
  0x11   :  { %511 = vmatprep.subr.bf16.mxu1 %v3095_v27 }
  0xda   :  { %v128_v10 = vpop.f32.mrb[0].mxu1 }
  0xdb   :  { %v129_v11 = vadd.f32 %v2486_v9, %v128_v10  ;;  %v2628_v12 = vpop.f32.mrb[1].mxu1 }
  0xdd   :  { %v191_v14 = vpack.c.bf16 %v129_v11, %v129_v11  ;;  %134 = vperm.xlu0 %2743, %v129_v11  }
  0xde   :  { %v185_v53 = vpop.f32.mrb[4].mxu1 }
  0xdf   :  { %v220_v18 = vsel %vm217_vm2, %v191_v14, %v2745_v13  ;;  %v2633_v55 = vpop.f32.mrb[5].mxu1  ;;  %v186_v6 = vadd.f32 %v2488_v5, %v185_v53 }
  0xe0   :  { %2637 = vmatprep.mubr.msk.bf16.mxu0 %vm58_vm1, %v220_v18  ;;  %v188_v57 = vpop.f32.mrb[6].mxu1 }
  0xe1   :  { %2638 = vmatmul.mubr.msk.bf16.vlgmr.msra.gmra.mrb[0].mxu0 %vm58_vm1, %v2746_v15  ;;  %v2634_v59 = vpop.f32.mrb[7].mxu1 }
  0xe2   :  { %2641 = vmatprep.mubr.msk.bf16.mxu0 %vm58_vm1, %v2747_v16  ;;  %452 = vmatpush1.bf16.msra.mxu0 %v3058_v17 }
  0xe3   :  { %453 = vmatprep.subr.bf16.mxu0 %v3063_v19 }
  0xe6   :  { %454 = vmatpush1.bf16.msra.mxu0 %v3072_v20 }
  0xe7   :  { %2657 = vmatprep.subr.bf16.mxu0 %v2974_v3 }
  0xe9   :  { %2642 = vmatmul.mubr.msk.bf16.gmra.mrb[4].mxu0 %vm58_vm1, %v2748_v21 }
  0xea   :  { %483 = vmatprep.mubr.bf16.mxu0 %v2976_v24 }
 0x15c   :  { %v3098_v28 = vpop.permute.xlu0 %134 }
 0x15d   :  { %v427_v30 = vpack.c.bf16 %v3098_v28, %v3098_v28  ;;  %612 = vrot.lane.b32.xlu1 %v3098_v28, %s2977_s9 }
 0x15f   :  { %2513 = vmatmul.mubr.msk.bf16.vlgmr.msra.gmra.mrb[8].mxu0 %vm325_vm3, %v427_v30 }
 0x160   :  { %2658 = vmatpush3.bf16.msra.mxu0 %v3103_v29  ;;  %2661 = vmatprep.mubr.msk.bf16.mxu0 %vm2973_vm0, %v2974_v3 }
 0x161   :  { %2659 = vmatprep.subr.bf16.mxu0 %v2974_v3 }
 0x164   :  { %2660 = vmatpush3.bf16.msra.mxu0 %v3114_v31 }
 0x165   :  { %739 = vmatprep.subr.bf16.mxu0 %v3040_v8 }
 0x167   :  { %2662 = vmatmul.mubr.msk.bf16.vlgmr.msra.gmra.mrb[12].mxu0 %vm325_vm3, %v427_v30 }
 0x168   :  { %740 = vmatpush1.bf16.msra.mxu0 %v3058_v17  ;;  %771 = vmatprep.mubr.bf16.mxu0 %v2976_v24 }
 0x169   :  { %741 = vmatprep.subr.bf16.mxu0 %v3063_v19 }
 0x16c   :  { %742 = vmatpush1.bf16.msra.mxu0 %v3072_v20 }
 0x16d   :  { %918 = vmatprep.subr.bf16.mxu0 %v3040_v8 }
 0x1b4   :  { %v2639_v32 = vpop.f32.mrb[0].mxu0 }
 0x1b5   :  { %v278_v34 = vpop.f32.mrb[1].mxu0  ;;  %v287_v36 = vadd.f32 %v2639_v32, %v2495_v33 }
 0x1b6   :  { %v2640_v35 = vpop.f32.mrb[2].mxu0  ;;  %v279_v39 = vadd.f32 %v2495_v33, %v278_v34 }
 0x1b7   :  { %v290_v37 = vadd.f32 %v2640_v35, %v2495_v33  ;;  %v281_v38 = vpop.f32.mrb[3].mxu0 }
 0x1b8   :  { %v282_v40 = vadd.f32 %v2495_v33, %v281_v38 }
 0x1b9   :  { %v310_v41 = vpack.c.bf16 %v290_v37, %v287_v36 }
 0x1ba   :  { %v309_v42 = vpack.c.bf16 %v282_v40, %v279_v39 }
 0x1bc   :  { %v2643_v45 = vpop.f32.mrb[4].mxu0  ;;  %2649 = vmatprep.mubr.msk.bf16.mxu1 %vm325_vm3, %v309_v42 }
 0x1bd   :  { %v303_v46 = vadd.f32 %v2643_v45, %v2495_v33  ;;  %v294_v47 = vpop.f32.mrb[5].mxu0  ;;  %2650 = vmatmul.mubr.msk.bf16.vlgmr.msra.gmra.mrb[8].mxu1 %vm325_vm3, %v310_v41 }
 0x1be   :  { %v295_v48 = vadd.f32 %v2495_v33, %v294_v47  ;;  %v2644_v49 = vpop.f32.mrb[6].mxu0  ;;  %512 = vmatpush1.bf16.msra.mxu1 %v3133_v43 }
 0x1bf   :  { %v306_v51 = vadd.f32 %v2644_v49, %v2495_v33  ;;  %v297_v52 = vpop.f32.mrb[7].mxu0  ;;  %513 = vmatprep.subr.bf16.mxu1 %v3138_v44 }
 0x1c0   :  { %v298_v54 = vadd.f32 %v2495_v33, %v297_v52 }
 0x1c1   :  { %v312_v56 = vpack.c.bf16 %v306_v51, %v303_v46 }
 0x1c2   :  { %v311_v58 = vpack.c.bf16 %v298_v54, %v295_v48  ;;  %514 = vmatpush1.bf16.msra.mxu1 %v3146_v50 }
 0x1c3   :  { %639 = vmatprep.subr.bf16.mxu1 %v3040_v8 }
 0x1c4   :  { %2653 = vmatprep.mubr.msk.bf16.mxu1 %vm325_vm3, %v311_v58  ;;  %v3190_v58 = vld [vmem:[%s3672_s6 + $0x1] ss:$0 sm:$0xff] }
 0x1c5   :  { %2654 = vmatmul.mubr.msk.bf16.gmra.mrb[12].mxu1 %vm325_vm3, %v312_v56 }
 0x1c6   :  { %543 = vmatprep.mubr.bf16.mxu1 %v2976_v24 }
 0x1cd   :  { %2518 = vmatmul.mubr.msk.bf16.vlgmr.msra.gmra.mrb[16].mxu1 %vm325_vm3, %v427_v30 }
 0x1ce   :  { %640 = vmatpush1.bf16.msra.mxu1 %v3058_v17  ;;  %671 = vmatprep.mubr.bf16.mxu1 %v2976_v24 }
 0x1cf   :  { %641 = vmatprep.subr.bf16.mxu1 %v3063_v19  ;;  %v613_v46 = vpop.permute.xlu1 %612 }
 0x1d2   :  { %642 = vmatpush1.bf16.msra.mxu1 %v3072_v20 }
 0x1d3   :  { %787 = vmatprep.subr.bf16.mxu1 %v3095_v27 }
 0x232   :  { %v485_v60 = vpop.f32.mrb[8].mxu0 }
 0x233   :  { %v487_v61 = vpop.f32.mrb[9].mxu0 }
 0x234   :  { %v488_v62 = vpop.f32.mrb[10].mxu0 }
 0x235   :  { %v489_v63 = vpop.f32.mrb[11].mxu0 }
 0x23a   :  { %v3160_v0 = vpop.f32.mrb[12].mxu0 }
 0x23b   :  { %v2663_v1 = vpop.f32.mrb[13].mxu0 }
 0x23c   :  { %v600_v2 = vpop.f32.mrb[14].mxu0 }
 0x23d   :  { %v2664_v4 = vpop.f32.mrb[15].mxu0 }
 0x290   :  { %v2651_v7 = vpop.f32.mrb[8].mxu1 }
 0x291   :  { %v3165_v9 = vadd.f32 %v2651_v7, %v186_v6  ;;  %v372_v10 = vpop.f32.mrb[9].mxu1 }
 0x292   :  { %v403_v11 = vadd.f32 %v372_v10, %v186_v6  ;;  %v2652_v12 = vpop.f32.mrb[10].mxu1 }
 0x293   :  { %v3167_v13 = vadd.f32 %v2652_v12, %v186_v6  ;;  %v375_v14 = vpop.f32.mrb[11].mxu1 }
 0x294   :  { %v604_v15 = vadd.f32 %v485_v60, %v403_v11  ;;  %v405_v16 = vadd.f32 %v375_v14, %v186_v6 }
 0x296   :  { %2768 = vtanh.f32 %v604_v15  ;;  %v2522_v38 = vmul.f32 -1.442695, %v604_v15 }
 0x298   :  { %v2655_v18 = vpop.f32.mrb[12].mxu1  ;;  %2770 = vpow2.f32 %v2522_v38 }
 0x299   :  { %v3169_v21 = vadd.f32 %v2655_v18, %v186_v6  ;;  %v388_v22 = vpop.f32.mrb[13].mxu1 }
 0x29a   :  { %v3171_v23 = vadd.f32 %v388_v22, %v186_v6  ;;  %v2656_v25 = vpop.f32.mrb[14].mxu1 }
 0x29b   :  { %v3173_v26 = vadd.f32 %v2656_v25, %v186_v6  ;;  %v391_v30 = vpop.f32.mrb[15].mxu1 }
 0x29c   :  { %v3175_v32 = vadd.f32 %v391_v30, %v186_v6 }
 0x2a0   :  { %v2769_v33 = vpop.eup %2768  ;;  %v545_v34 = vpop.f32.mrb[16].mxu1 }
 0x2a1   :  { %617 = vrot.lane.b32.xlu0 %v2769_v33, %s2978_s20  ;;  %v547_v35 = vpop.f32.mrb[17].mxu1 }
 0x2a2   :  { %v548_v36 = vpop.f32.mrb[18].mxu1  ;;  %v2771_v39 = vpop.eup %2770 }
 0x2a3   :  { %v549_v37 = vpop.f32.mrb[19].mxu1  ;;  %v608_v40 = vadd.f32 1.0, %v2771_v39 }
 0x2a5   :  { %2772 = vrcp.f32 %v608_v40 }
 0x2af   :  { %v2773_v41 = vpop.eup %2772 }
 0x2b0   :  { %v615_v47 = vmul.f32 %v2773_v41, %v613_v46 }
 0x313   :  { %v618_v42 = vpop.permute.xlu0 %617 }
 0x314   :  { %v620_v45 = vmul.f32 %v2773_v41, %v618_v42 }
 0x316   :  { %622 = vrot.lane.b32.xlu1 %v620_v45, %s2977_s9 }
 0x388   :  { %v623_v48 = vpop.permute.xlu1 %622 }
 0x389   :  { %v625_v49 = vadd.f32 %v623_v48, %v615_v47 }
 0x38b   :  { %2774 = vtanh.f32 %v625_v49 }
 0x395   :  { %v2775_v51 = vpop.eup %2774 }
 0x396   :  { %628 = vrot.lane.b32.xlu0 %v2775_v51, %s2978_s20 }
 0x408   :  { %v629_v52 = vpop.permute.xlu0 %628 }
 0x409   :  { %v631_v53 = vmul.f32 %v2773_v41, %v629_v52 }
 0x40b   :  { %v632_v54 = vpack.c.bf16 %v631_v53, %v631_v53 }
 0x40d   :  { %634 = vrot.lane.b32.xlu1 %v632_v54, %s2977_s9 }
 0x47f   :  { %v635_v55 = vpop.permute.xlu1 %634 }
 0x480   :  { %2523 = vmatmul.mubr.msk.bf16.vlgmr.msra.gmra.mrb[20].mxu1 %vm325_vm3, %v635_v55 }
 0x481   :  { %788 = vmatpush1.bf16.msra.mxu1 %v3133_v43  ;;  %819 = vmatprep.mubr.bf16.mxu1 %v2976_v24 }
 0x482   :  { %789 = vmatprep.subr.bf16.mxu1 %v3138_v44 }
 0x485   :  { %790 = vmatpush1.bf16.msra.mxu1 %v3146_v50 }
 0x486   :  { %966 = vmatprep.subr.bf16.mxu1 %v3095_v27 }
 0x553   :  { %v673_v56 = vpop.f32.mrb[20].mxu1 }
 0x554   :  { %v681_v57 = vadd.f32 %v673_v56, %v405_v16  ;;  %v675_v59 = vpop.f32.mrb[21].mxu1 }
 0x555   :  { %v682_v60 = vadd.f32 %v675_v59, %v545_v34  ;;  %v677_v61 = vpop.f32.mrb[22].mxu1 }
 0x556   :  { %2776 = vtanh.f32 %v681_v57  ;;  %v678_v62 = vpop.f32.mrb[23].mxu1  ;;  %v2524_v4 = vmul.f32 -1.442695, %v681_v57  ;;  %v3224_v57 = vld [vmem:[%s3672_s6 + $0x2] ss:$0 sm:$0xff] }
 0x557   :  { %v683_v63 = vadd.f32 %v3190_v58, %v682_v60 }
 0x559   :  { %2778 = vtanh.f32 %v683_v63  ;;  %v2525_v5 = vmul.f32 -1.442695, %v683_v63 }
 0x55a   :  { %2780 = vpow2.f32 %v2524_v4 }
 0x55b   :  { %2782 = vpow2.f32 %v2525_v5 }
 0x560   :  { %v2777_v1 = vpop.eup %2776 }
 0x561   :  { %702 = vrot.lane.b32.xlu0 %v2777_v1, %s2978_s20 }
 0x563   :  { %v2779_v2 = vpop.eup %2778 }
 0x564   :  { %704 = vrot.lane.b32.xlu1 %v2779_v2, %s2978_s20  ;;  %v2781_v6 = vpop.eup %2780 }
 0x565   :  { %v2783_v7 = vpop.eup %2782  ;;  %v690_v10 = vadd.f32 1.0, %v2781_v6 }
 0x566   :  { %v691_v11 = vadd.f32 1.0, %v2783_v7 }
 0x567   :  { %2784 = vrcp.f32 %v690_v10 }
 0x568   :  { %2786 = vrcp.f32 %v691_v11 }
 0x571   :  { %v2785_v12 = vpop.eup %2784 }
 0x572   :  { %v2787_v16 = vpop.eup %2786  ;;  %v698_v25 = vmul.f32 %v2785_v12, %v625_v49 }
 0x573   :  { %v699_v34 = vmul.f32 %v2787_v16, %v3098_v28 }
 0x5d3   :  { %v703_v14 = vpop.permute.xlu0 %702 }
 0x5d4   :  { %v708_v15 = vmul.f32 %v2785_v12, %v703_v14 }
 0x5d6   :  { %712 = vrot.lane.b32.xlu0 %v708_v15, %s2977_s9  ;;  %v705_v18 = vpop.permute.xlu1 %704 }
 0x5d7   :  { %v709_v22 = vmul.f32 %v2787_v16, %v705_v18 }
 0x5d9   :  { %714 = vrot.lane.b32.xlu1 %v709_v22, %s2977_s9 }
 0x648   :  { %v713_v30 = vpop.permute.xlu0 %712 }
 0x649   :  { %v3197_v33 = vadd.f32 %v713_v30, %v698_v25 }
 0x64b   :  { %2788 = vtanh.f32 %v3197_v33  ;;  %v715_v35 = vpop.permute.xlu1 %714 }
 0x64c   :  { %v3201_v36 = vadd.f32 %v715_v35, %v699_v34 }
 0x64e   :  { %2790 = vtanh.f32 %v3201_v36 }
 0x655   :  { %v2789_v37 = vpop.eup %2788 }
 0x656   :  { %724 = vrot.lane.b32.xlu0 %v2789_v37, %s2978_s20 }
 0x658   :  { %v2791_v38 = vpop.eup %2790 }
 0x659   :  { %726 = vrot.lane.b32.xlu1 %v2791_v38, %s2978_s20 }
 0x6c8   :  { %v725_v39 = vpop.permute.xlu0 %724 }
 0x6c9   :  { %v730_v40 = vmul.f32 %v2785_v12, %v725_v39 }
 0x6cb   :  { %v732_v41 = vpack.c.bf16 %v730_v40, %v730_v40  ;;  %v727_v42 = vpop.permute.xlu1 %726 }
 0x6cc   :  { %v731_v45 = vmul.f32 %v2787_v16, %v727_v42 }
 0x6cd   :  { %734 = vrot.lane.b32.xlu0 %v732_v41, %s2977_s9 }
 0x6ce   :  { %v780_v46 = vpack.c.bf16 %v731_v45, %v731_v45 }
 0x6d0   :  { %782 = vrot.lane.b32.xlu1 %v780_v46, %s2977_s9 }
 0x73f   :  { %v735_v47 = vpop.permute.xlu0 %734 }
 0x740   :  { %2526 = vmatmul.mubr.msk.bf16.vlgmr.msra.gmra.mrb[16].mxu0 %vm325_vm3, %v735_v47 }
 0x741   :  { %919 = vmatpush1.bf16.msra.mxu0 %v3058_v17  ;;  %950 = vmatprep.mubr.bf16.mxu0 %v2976_v24 }
 0x742   :  { %v783_v48 = vpop.permute.xlu1 %782  ;;  %920 = vmatprep.subr.bf16.mxu0 %v3063_v19 }
 0x743   :  { %2527 = vmatmul.mubr.msk.bf16.vlgmr.msra.gmra.mrb[24].mxu1 %vm325_vm3, %v783_v48 }
 0x744   :  { %967 = vmatpush1.bf16.msra.mxu1 %v3133_v43  ;;  %998 = vmatprep.mubr.bf16.mxu1 %v2976_v24 }
 0x745   :  { %921 = vmatpush1.bf16.msra.mxu0 %v3072_v20  ;;  %968 = vmatprep.subr.bf16.mxu1 %v3138_v44 }
 0x746   :  { %2665 = vmatprep.subr.bf16.mxu0 %v2974_v3 }
 0x748   :  { %969 = vmatpush1.bf16.msra.mxu1 %v3146_v50 }
 0x749   :  { %1144 = vmatprep.subr.bf16.mxu1 %v3040_v8 }
 0x813   :  { %v773_v49 = vpop.f32.mrb[16].mxu0 }
 0x814   :  { %v829_v51 = vadd.f32 %v773_v49, %v3165_v9  ;;  %v775_v52 = vpop.f32.mrb[17].mxu0 }
 0x815   :  { %v777_v53 = vpop.f32.mrb[18].mxu0 }
 0x816   :  { %2792 = vtanh.f32 %v829_v51  ;;  %v778_v54 = vpop.f32.mrb[19].mxu0  ;;  %v821_v55 = vpop.f32.mrb[24].mxu1  ;;  %v2528_v5 = vmul.f32 -1.442695, %v829_v51 }
 0x817   :  { %v830_v56 = vadd.f32 %v821_v55, %v775_v52  ;;  %v823_v59 = vpop.f32.mrb[25].mxu1 }
 0x818   :  { %v832_v60 = vadd.f32 %v823_v59, %v3160_v0  ;;  %v825_v61 = vpop.f32.mrb[26].mxu1 }
 0x819   :  { %v831_v62 = vadd.f32 %v3190_v58, %v830_v56  ;;  %v826_v63 = vpop.f32.mrb[27].mxu1 }
 0x81a   :  { %v833_v9 = vadd.f32 %v3224_v57, %v832_v60 }
 0x81b   :  { %2794 = vtanh.f32 %v831_v62  ;;  %v2529_v0 = vmul.f32 -1.442695, %v831_v62 }
 0x81c   :  { %2796 = vtanh.f32 %v833_v9  ;;  %v2530_v6 = vmul.f32 -1.442695, %v833_v9 }
 0x81d   :  { %2798 = vpow2.f32 %v2528_v5 }
 0x81e   :  { %2800 = vpow2.f32 %v2529_v0 }
 0x81f   :  { %2802 = vpow2.f32 %v2530_v6 }
 0x820   :  { %v2793_v1 = vpop.eup %2792 }
 0x821   :  { %861 = vrot.lane.b32.xlu0 %v2793_v1, %s2978_s20 }
 0x825   :  { %v2795_v2 = vpop.eup %2794 }
 0x826   :  { %v2797_v4 = vpop.eup %2796  ;;  %863 = vrot.lane.b32.xlu1 %v2795_v2, %s2978_s20 }
 0x827   :  { %865 = vrot.lane.b32.xlu0 %v2797_v4, %s2978_s20  ;;  %v2799_v7 = vpop.eup %2798 }
 0x828   :  { %v843_v10 = vadd.f32 1.0, %v2799_v7  ;;  %v2801_v11 = vpop.eup %2800 }
 0x829   :  { %v2803_v12 = vpop.eup %2802  ;;  %v844_v14 = vadd.f32 1.0, %v2801_v11 }
 0x82a   :  { %2804 = vrcp.f32 %v843_v10  ;;  %v845_v15 = vadd.f32 1.0, %v2803_v12 }
 0x82b   :  { %2806 = vrcp.f32 %v844_v14 }
 0x82c   :  { %2808 = vrcp.f32 %v845_v15 }
 0x834   :  { %v2805_v16 = vpop.eup %2804 }
 0x835   :  { %v2807_v25 = vpop.eup %2806  ;;  %v855_v39 = vmul.f32 %v2805_v16, %v3197_v33 }
 0x836   :  { %v2809_v34 = vpop.eup %2808  ;;  %v856_v42 = vmul.f32 %v2807_v25, %v3201_v36 }
 0x837   :  { %v857_v46 = vmul.f32 %v2809_v34, %v3098_v28 }
 0x893   :  { %v862_v18 = vpop.permute.xlu0 %861 }
 0x894   :  { %v870_v22 = vmul.f32 %v2805_v16, %v862_v18 }
 0x896   :  { %876 = vrot.lane.b32.xlu1 %v870_v22, %s2977_s9 }
 0x898   :  { %v864_v30 = vpop.permute.xlu1 %863 }
 0x899   :  { %v871_v35 = vmul.f32 %v2807_v25, %v864_v30  ;;  %v866_v37 = vpop.permute.xlu0 %865 }
 0x89a   :  { %v872_v38 = vmul.f32 %v2809_v34, %v866_v37 }
 0x89b   :  { %878 = vrot.lane.b32.xlu0 %v871_v35, %s2977_s9 }
 0x89c   :  { %880 = vrot.lane.b32.xlu1 %v872_v38, %s2977_s9 }
 0x908   :  { %v877_v40 = vpop.permute.xlu1 %876 }
 0x909   :  { %v3236_v41 = vadd.f32 %v877_v40, %v855_v39 }
 0x90b   :  { %2810 = vtanh.f32 %v3236_v41 }
 0x90d   :  { %v879_v45 = vpop.permute.xlu0 %878 }
 0x90e   :  { %v3241_v47 = vadd.f32 %v879_v45, %v856_v42  ;;  %v881_v48 = vpop.permute.xlu1 %880 }
 0x90f   :  { %v3243_v49 = vadd.f32 %v881_v48, %v857_v46 }
 0x910   :  { %2812 = vtanh.f32 %v3241_v47 }
 0x911   :  { %2814 = vtanh.f32 %v3243_v49 }
 0x915   :  { %v2811_v33 = vpop.eup %2810 }
 0x916   :  { %894 = vrot.lane.b32.xlu0 %v2811_v33, %s2978_s20 }
 0x91a   :  { %v2813_v51 = vpop.eup %2812 }
 0x91b   :  { %v2815_v52 = vpop.eup %2814  ;;  %896 = vrot.lane.b32.xlu1 %v2813_v51, %s2978_s20 }
 0x91c   :  { %898 = vrot.lane.b32.xlu0 %v2815_v52, %s2978_s20 }
 0x988   :  { %v895_v36 = vpop.permute.xlu0 %894 }
 0x989   :  { %v903_v28 = vmul.f32 %v2805_v16, %v895_v36 }
 0x98b   :  { %v911_v53 = vpack.c.bf16 %v903_v28, %v903_v28 }
 0x98d   :  { %913 = vrot.lane.b32.xlu1 %v911_v53, %s2977_s9  ;;  %v897_v54 = vpop.permute.xlu1 %896 }
 0x98e   :  { %v904_v55 = vmul.f32 %v2807_v25, %v897_v54  ;;  %v899_v56 = vpop.permute.xlu0 %898 }
 0x98f   :  { %v3251_v59 = vmul.f32 %v2809_v34, %v899_v56 }
 0x990   :  { %v959_v60 = vpack.c.bf16 %v904_v55, %v904_v55 }
 0x991   :  { %v1007_v61 = vpack.c.bf16 %v3251_v59, %v3251_v59 }
 0x992   :  { %961 = vrot.lane.b32.xlu0 %v959_v60, %s2977_s9 }
 0x993   :  { %1009 = vrot.lane.b32.xlu1 %v1007_v61, %s2977_s9 }
 0x9ff   :  { %v914_v62 = vpop.permute.xlu1 %913 }
 0xa00   :  { %2531 = vmatmul.mubr.msk.bf16.vlgmr.msra.gmra.mrb[20].mxu0 %vm325_vm3, %v914_v62 }
 0xa01   :  { %2666 = vmatpush3.bf16.msra.mxu0 %v3103_v29  ;;  %2669 = vmatprep.mubr.msk.bf16.mxu0 %vm2973_vm0, %v2974_v3 }
 0xa02   :  { %2667 = vmatprep.subr.bf16.mxu0 %v2974_v3 }
 0xa04   :  { %v962_v63 = vpop.permute.xlu0 %961 }
 0xa05   :  { %2668 = vmatpush3.bf16.msra.mxu0 %v3114_v31  ;;  %2532 = vmatmul.mubr.msk.bf16.vlgmr.msra.gmra.mrb[28].mxu1 %vm325_vm3, %v962_v63  ;;  %v1010_v9 = vpop.permute.xlu1 %1009 }
 0xa06   :  { %1145 = vmatpush1.bf16.msra.mxu1 %v3058_v17  ;;  %1176 = vmatprep.mubr.bf16.mxu1 %v2976_v24 }
 0xa07   :  { %1146 = vmatprep.subr.bf16.mxu1 %v3063_v19  ;;  %1192 = vmatprep.subr.bf16.mxu0 %v3095_v27 }
 0xa08   :  { %2670 = vmatmul.mubr.msk.bf16.vlgmr.msra.gmra.mrb[24].mxu0 %vm325_vm3, %v1010_v9 }
 0xa09   :  { %1193 = vmatpush1.bf16.msra.mxu0 %v3133_v43  ;;  %1224 = vmatprep.mubr.bf16.mxu0 %v2976_v24 }
 0xa0a   :  { %1147 = vmatpush1.bf16.msra.mxu1 %v3072_v20  ;;  %1194 = vmatprep.subr.bf16.mxu0 %v3138_v44 }
 0xa0b   :  { %2673 = vmatprep.subr.bf16.mxu1 %v2974_v3 }
 0xa0d   :  { %1195 = vmatpush1.bf16.msra.mxu0 %v3146_v50 }
 0xa0e   :  { %1370 = vmatprep.subr.bf16.mxu0 %v3040_v8 }
 0xad3   :  { %v952_v1 = vpop.f32.mrb[20].mxu0 }
 0xad4   :  { %v1055_v2 = vadd.f32 %v952_v1, %v3167_v13  ;;  %v954_v4 = vpop.f32.mrb[21].mxu0 }
 0xad5   :  { %v956_v5 = vpop.f32.mrb[22].mxu0 }
 0xad6   :  { %2816 = vtanh.f32 %v1055_v2  ;;  %v957_v0 = vpop.f32.mrb[23].mxu0  ;;  %v2534_v37 = vmul.f32 -1.442695, %v1055_v2 }
 0xad8   :  { %v1000_v6 = vpop.f32.mrb[28].mxu1 }
 0xad9   :  { %v1056_v7 = vadd.f32 %v1000_v6, %v954_v4  ;;  %v1002_v10 = vpop.f32.mrb[29].mxu1 }
 0xada   :  { %v1004_v11 = vpop.f32.mrb[30].mxu1 }
 0xadb   :  { %v1057_v12 = vadd.f32 %v3190_v58, %v1056_v7  ;;  %v1005_v14 = vpop.f32.mrb[31].mxu1  ;;  %v1048_v15 = vpop.f32.mrb[24].mxu0 }
 0xadc   :  { %v1058_v16 = vadd.f32 %v1048_v15, %v1002_v10  ;;  %v2671_v18 = vpop.f32.mrb[25].mxu0 }
 0xadd   :  { %2818 = vtanh.f32 %v1057_v12  ;;  %v1051_v22 = vpop.f32.mrb[26].mxu0  ;;  %v2535_v38 = vmul.f32 -1.442695, %v1057_v12 }
 0xade   :  { %v1059_v25 = vadd.f32 %v3224_v57, %v1058_v16  ;;  %v2672_v30 = vpop.f32.mrb[27].mxu0 }
 0xae0   :  { %v2817_v13 = vpop.eup %2816  ;;  %2820 = vtanh.f32 %v1059_v25  ;;  %v2536_v39 = vmul.f32 -1.442695, %v1059_v25 }
 0xae1   :  { %1087 = vrot.lane.b32.xlu0 %v2817_v13, %s2978_s20  ;;  %2822 = vpow2.f32 %v2534_v37 }
 0xae2   :  { %2824 = vpow2.f32 %v2535_v38 }
 0xae3   :  { %2826 = vpow2.f32 %v2536_v39 }
 0xae7   :  { %v2819_v34 = vpop.eup %2818 }
 0xae8   :  { %1089 = vrot.lane.b32.xlu1 %v2819_v34, %s2978_s20 }
 0xaea   :  { %v2821_v35 = vpop.eup %2820 }
 0xaeb   :  { %1091 = vrot.lane.b32.xlu0 %v2821_v35, %s2978_s20  ;;  %v2823_v40 = vpop.eup %2822 }
 0xaec   :  { %v1069_v42 = vadd.f32 1.0, %v2823_v40  ;;  %v2825_v45 = vpop.eup %2824 }
 0xaed   :  { %v2827_v46 = vpop.eup %2826  ;;  %v1070_v48 = vadd.f32 1.0, %v2825_v45 }
 0xaee   :  { %2828 = vrcp.f32 %v1069_v42  ;;  %v1071_v33 = vadd.f32 1.0, %v2827_v46 }
 0xaef   :  { %2830 = vrcp.f32 %v1070_v48 }
 0xaf0   :  { %2832 = vrcp.f32 %v1071_v33 }
 0xaf8   :  { %v2829_v51 = vpop.eup %2828 }
 0xaf9   :  { %v2831_v28 = vpop.eup %2830  ;;  %v1081_v61 = vmul.f32 %v2829_v51, %v3236_v41 }
 0xafa   :  { %v2833_v55 = vpop.eup %2832  ;;  %v1082_v9 = vmul.f32 %v2831_v28, %v3241_v47 }
 0xafb   :  { %v1083_v4 = vmul.f32 %v2833_v55, %v3243_v49 }
 0xb53   :  { %v1088_v52 = vpop.permute.xlu0 %1087 }
 0xb54   :  { %v1096_v36 = vmul.f32 %v2829_v51, %v1088_v52 }
 0xb56   :  { %1102 = vrot.lane.b32.xlu1 %v1096_v36, %s2977_s9 }
 0xb5a   :  { %v1090_v53 = vpop.permute.xlu1 %1089 }
 0xb5b   :  { %v1097_v54 = vmul.f32 %v2831_v28, %v1090_v53 }
 0xb5d   :  { %1104 = vrot.lane.b32.xlu0 %v1097_v54, %s2977_s9  ;;  %v1092_v56 = vpop.permute.xlu0 %1091 }
 0xb5e   :  { %v1098_v60 = vmul.f32 %v2833_v55, %v1092_v56 }
 0xb60   :  { %1106 = vrot.lane.b32.xlu1 %v1098_v60, %s2977_s9 }
 0xbc8   :  { %v1103_v62 = vpop.permute.xlu1 %1102 }
 0xbc9   :  { %v3286_v63 = vadd.f32 %v1103_v62, %v1081_v61 }
 0xbcb   :  { %2834 = vtanh.f32 %v3286_v63 }
 0xbcf   :  { %v1105_v1 = vpop.permute.xlu0 %1104 }
 0xbd0   :  { %v3290_v2 = vadd.f32 %v1105_v1, %v1082_v9 }
 0xbd2   :  { %2836 = vtanh.f32 %v3290_v2  ;;  %v1107_v5 = vpop.permute.xlu1 %1106 }
 0xbd3   :  { %v3294_v0 = vadd.f32 %v1107_v5, %v1083_v4 }
 0xbd5   :  { %v2835_v6 = vpop.eup %2834  ;;  %2838 = vtanh.f32 %v3294_v0 }
 0xbd6   :  { %1120 = vrot.lane.b32.xlu0 %v2835_v6, %s2978_s20 }
 0xbdc   :  { %v2837_v41 = vpop.eup %2836 }
 0xbdd   :  { %1122 = vrot.lane.b32.xlu1 %v2837_v41, %s2978_s20 }
 0xbdf   :  { %v2839_v7 = vpop.eup %2838 }
 0xbe0   :  { %1124 = vrot.lane.b32.xlu0 %v2839_v7, %s2978_s20 }
 0xc48   :  { %v1121_v47 = vpop.permute.xlu0 %1120 }
 0xc49   :  { %v1129_v10 = vmul.f32 %v2829_v51, %v1121_v47 }
 0xc4b   :  { %v1137_v11 = vpack.c.bf16 %v1129_v10, %v1129_v10 }
 0xc4d   :  { %1139 = vrot.lane.b32.xlu1 %v1137_v11, %s2977_s9 }
 0xc4f   :  { %v1123_v49 = vpop.permute.xlu1 %1122 }
 0xc50   :  { %v1130_v12 = vmul.f32 %v2831_v28, %v1123_v49 }
 0xc52   :  { %v1185_v14 = vpack.c.bf16 %v1130_v12, %v1130_v12  ;;  %v1125_v15 = vpop.permute.xlu0 %1124 }
 0xc53   :  { %v3301_v16 = vmul.f32 %v2833_v55, %v1125_v15 }
 0xc54   :  { %1187 = vrot.lane.b32.xlu0 %v1185_v14, %s2977_s9 }
 0xc55   :  { %v1233_v18 = vpack.c.bf16 %v3301_v16, %v3301_v16 }
 0xc57   :  { %1235 = vrot.lane.b32.xlu1 %v1233_v18, %s2977_s9 }
 0xcbf   :  { %v1140_v22 = vpop.permute.xlu1 %1139 }
 0xcc0   :  { %2537 = vmatmul.mubr.msk.bf16.vlgmr.msra.gmra.mrb[32].mxu1 %vm325_vm3, %v1140_v22 }
 0xcc1   :  { %2674 = vmatpush3.bf16.msra.mxu1 %v3103_v29  ;;  %2677 = vmatprep.mubr.msk.bf16.mxu1 %vm2973_vm0, %v2974_v3 }
 0xcc2   :  { %2675 = vmatprep.subr.bf16.mxu1 %v2974_v3 }
 0xcc5   :  { %2676 = vmatpush3.bf16.msra.mxu1 %v3114_v31 }
 0xcc6   :  { %v1188_v25 = vpop.permute.xlu0 %1187  ;;  %1418 = vmatprep.subr.bf16.mxu1 %v3095_v27 }
 0xcc7   :  { %2538 = vmatmul.mubr.msk.bf16.vlgmr.msra.gmra.mrb[28].mxu0 %vm325_vm3, %v1188_v25 }
 0xcc8   :  { %1371 = vmatpush1.bf16.msra.mxu0 %v3058_v17  ;;  %1402 = vmatprep.mubr.bf16.mxu0 %v2976_v24 }
 0xcc9   :  { %v1236_v30 = vpop.permute.xlu1 %1235  ;;  %1372 = vmatprep.subr.bf16.mxu0 %v3063_v19 }
 0xcca   :  { %2678 = vmatmul.mubr.msk.bf16.vlgmr.msra.gmra.mrb[36].mxu1 %vm325_vm3, %v1236_v30 }
 0xccb   :  { %1419 = vmatpush1.bf16.msra.mxu1 %v3133_v43  ;;  %1450 = vmatprep.mubr.bf16.mxu1 %v2976_v24 }
 0xccc   :  { %1373 = vmatpush1.bf16.msra.mxu0 %v3072_v20  ;;  %1420 = vmatprep.subr.bf16.mxu1 %v3138_v44 }
 0xccd   :  { %2681 = vmatprep.subr.bf16.mxu0 %v2974_v3 }
 0xccf   :  { %1421 = vmatpush1.bf16.msra.mxu1 %v3146_v50 }
 0xcd0   :  { %1596 = vmatprep.subr.bf16.mxu1 %v3040_v8 }
 0xd93   :  { %v1178_v17 = vpop.f32.mrb[32].mxu1 }
 0xd94   :  { %v1281_v13 = vadd.f32 %v1178_v17, %v3171_v23  ;;  %v1180_v19 = vpop.f32.mrb[33].mxu1 }
 0xd95   :  { %v1182_v34 = vpop.f32.mrb[34].mxu1 }
 0xd96   :  { %2840 = vtanh.f32 %v1281_v13  ;;  %v1183_v35 = vpop.f32.mrb[35].mxu1  ;;  %v2540_v28 = vmul.f32 -1.442695, %v1281_v13 }
 0xd9a   :  { %v1226_v37 = vpop.f32.mrb[28].mxu0 }
 0xd9b   :  { %v1282_v38 = vadd.f32 %v1226_v37, %v1180_v19  ;;  %v1228_v39 = vpop.f32.mrb[29].mxu0 }
 0xd9c   :  { %v1230_v40 = vpop.f32.mrb[30].mxu0 }
 0xd9d   :  { %v1283_v20 = vadd.f32 %v3190_v58, %v1282_v38  ;;  %v1231_v42 = vpop.f32.mrb[31].mxu0  ;;  %v1274_v45 = vpop.f32.mrb[36].mxu1 }
 0xd9e   :  { %v1284_v46 = vadd.f32 %v1274_v45, %v1228_v39  ;;  %v2679_v48 = vpop.f32.mrb[37].mxu1 }
 0xd9f   :  { %2842 = vtanh.f32 %v1283_v20  ;;  %v1277_v33 = vpop.f32.mrb[38].mxu1  ;;  %v2541_v53 = vmul.f32 -1.442695, %v1283_v20  ;;  %v3375_v48 = vld [vmem:[%s3671_s2 + $0x14] ss:$8 sps:$4 sm:$0xff]  }
 0xda0   :  { %v2841_v8 = vpop.eup %2840  ;;  %v1285_v51 = vadd.f32 %v3224_v57, %v1284_v46  ;;  %v2680_v23 = vpop.f32.mrb[39].mxu1  ;;  %v3368_v46 = vld [vmem:[%s3671_s2] ss:$8 sps:$4 sm:$0xff]  }
 0xda1   :  { %1313 = vrot.lane.b32.xlu0 %v2841_v8, %s2978_s20 }
 0xda2   :  { %2844 = vtanh.f32 %v1285_v51  ;;  %v2542_v54 = vmul.f32 -1.442695, %v1285_v51 }
 0xda3   :  { %2846 = vpow2.f32 %v2540_v28 }
 0xda4   :  { %2848 = vpow2.f32 %v2541_v53 }
 0xda5   :  { %2850 = vpow2.f32 %v2542_v54 }
 0xda9   :  { %v2843_v52 = vpop.eup %2842 }
 0xdaa   :  { %1315 = vrot.lane.b32.xlu1 %v2843_v52, %s2978_s20 }
 0xdac   :  { %v2845_v36 = vpop.eup %2844 }
 0xdad   :  { %1317 = vrot.lane.b32.xlu0 %v2845_v36, %s2978_s20  ;;  %v2847_v55 = vpop.eup %2846 }
 0xdae   :  { %v1295_v56 = vadd.f32 1.0, %v2847_v55  ;;  %v2849_v60 = vpop.eup %2848 }
 0xdaf   :  { %v2851_v61 = vpop.eup %2850  ;;  %v1296_v62 = vadd.f32 1.0, %v2849_v60 }
 0xdb0   :  { %2852 = vrcp.f32 %v1295_v56  ;;  %v1297_v9 = vadd.f32 1.0, %v2851_v61 }
 0xdb1   :  { %2854 = vrcp.f32 %v1296_v62 }
 0xdb2   :  { %2856 = vrcp.f32 %v1297_v9 }
 0xdba   :  { %v2853_v1 = vpop.eup %2852 }
 0xdbb   :  { %v2855_v6 = vpop.eup %2854  ;;  %v1307_v49 = vmul.f32 %v2853_v1, %v3286_v63 }
 0xdbc   :  { %v2857_v47 = vpop.eup %2856  ;;  %v1308_v15 = vmul.f32 %v2855_v6, %v3290_v2 }
 0xdbd   :  { %v1309_v25 = vmul.f32 %v2857_v47, %v3294_v0 }
 0xe13   :  { %v1314_v4 = vpop.permute.xlu0 %1313 }
 0xe14   :  { %v1322_v5 = vmul.f32 %v2853_v1, %v1314_v4 }
 0xe16   :  { %1328 = vrot.lane.b32.xlu1 %v1322_v5, %s2977_s9 }
 0xe1c   :  { %v1316_v41 = vpop.permute.xlu1 %1315 }
 0xe1d   :  { %v1323_v7 = vmul.f32 %v2855_v6, %v1316_v41 }
 0xe1f   :  { %1330 = vrot.lane.b32.xlu0 %v1323_v7, %s2977_s9  ;;  %v1318_v10 = vpop.permute.xlu0 %1317 }
 0xe20   :  { %v1324_v11 = vmul.f32 %v2857_v47, %v1318_v10 }
 0xe22   :  { %1332 = vrot.lane.b32.xlu1 %v1324_v11, %s2977_s9 }
 0xe88   :  { %v1329_v12 = vpop.permute.xlu1 %1328 }
 0xe89   :  { %v3336_v14 = vadd.f32 %v1329_v12, %v1307_v49 }
 0xe8b   :  { %2858 = vtanh.f32 %v3336_v14 }
 0xe91   :  { %v1331_v18 = vpop.permute.xlu0 %1330 }
 0xe92   :  { %v3340_v22 = vadd.f32 %v1331_v18, %v1308_v15 }
 0xe94   :  { %2860 = vtanh.f32 %v3340_v22  ;;  %v1333_v30 = vpop.permute.xlu1 %1332 }
 0xe95   :  { %v2859_v17 = vpop.eup %2858  ;;  %v3344_v13 = vadd.f32 %v1333_v30, %v1309_v25 }
 0xe96   :  { %1346 = vrot.lane.b32.xlu0 %v2859_v17, %s2978_s20 }
 0xe97   :  { %2862 = vtanh.f32 %v3344_v13 }
 0xe9e   :  { %v2861_v63 = vpop.eup %2860 }
 0xe9f   :  { %1348 = vrot.lane.b32.xlu1 %v2861_v63, %s2978_s20 }
 0xea1   :  { %v2863_v19 = vpop.eup %2862 }
 0xea2   :  { %1350 = vrot.lane.b32.xlu0 %v2863_v19, %s2978_s20 }
 0xf08   :  { %v1347_v2 = vpop.permute.xlu0 %1346 }
 0xf09   :  { %v1355_v34 = vmul.f32 %v2853_v1, %v1347_v2 }
 0xf0b   :  { %v1363_v35 = vpack.c.bf16 %v1355_v34, %v1355_v34 }
 0xf0d   :  { %1365 = vrot.lane.b32.xlu1 %v1363_v35, %s2977_s9 }
 0xf11   :  { %v1349_v0 = vpop.permute.xlu1 %1348 }
 0xf12   :  { %v1356_v37 = vmul.f32 %v2855_v6, %v1349_v0 }
 0xf14   :  { %v1411_v38 = vpack.c.bf16 %v1356_v37, %v1356_v37  ;;  %v1351_v39 = vpop.permute.xlu0 %1350 }
 0xf15   :  { %v3351_v40 = vmul.f32 %v2857_v47, %v1351_v39 }
 0xf16   :  { %1413 = vrot.lane.b32.xlu0 %v1411_v38, %s2977_s9 }
 0xf17   :  { %v1459_v20 = vpack.c.bf16 %v3351_v40, %v3351_v40 }
 0xf19   :  { %1461 = vrot.lane.b32.xlu1 %v1459_v20, %s2977_s9 }
 0xf7f   :  { %v1366_v42 = vpop.permute.xlu1 %1365 }
 0xf80   :  { %2543 = vmatmul.mubr.msk.bf16.vlgmr.msra.gmra.mrb[32].mxu0 %vm325_vm3, %v1366_v42 }
 0xf81   :  { %2682 = vmatpush3.bf16.msra.mxu0 %v3103_v29  ;;  %2685 = vmatprep.mubr.msk.bf16.mxu0 %vm2973_vm0, %v2974_v3 }
 0xf82   :  { %2683 = vmatprep.subr.bf16.mxu0 %v2974_v3 }
 0xf85   :  { %2684 = vmatpush3.bf16.msra.mxu0 %v3114_v31  ;;  %v3393_v31 = vld [vmem:[%s3671_s2 + $0x4] ss:$8 sps:$4 sm:$0xff]  }
 0xf86   :  { %1644 = vmatprep.subr.bf16.mxu0 %v3095_v27  ;;  %v3384_v27 = vld [vmem:[%s3671_s2 + $0x10] ss:$8 sps:$4 sm:$0xff]  }
 0xf88   :  { %v1414_v45 = vpop.permute.xlu0 %1413 }
 0xf89   :  { %2544 = vmatmul.mubr.msk.bf16.vlgmr.msra.gmra.mrb[40].mxu1 %vm325_vm3, %v1414_v45 }
 0xf8a   :  { %1597 = vmatpush1.bf16.msra.mxu1 %v3368_v46  ;;  %1628 = vmatprep.mubr.bf16.mxu1 %v2976_v24 }
 0xf8b   :  { %v1462_v29 = vpop.permute.xlu1 %1461  ;;  %1598 = vmatprep.subr.bf16.mxu1 %v3375_v48 }
 0xf8c   :  { %2686 = vmatmul.mubr.msk.bf16.vlgmr.msra.gmra.mrb[36].mxu0 %vm325_vm3, %v1462_v29 }
 0xf8d   :  { %1645 = vmatpush1.bf16.msra.mxu0 %v3133_v43  ;;  %1676 = vmatprep.mubr.bf16.mxu0 %v2976_v24 }
 0xf8e   :  { %1599 = vmatpush1.bf16.msra.mxu1 %v3384_v27  ;;  %1646 = vmatprep.subr.bf16.mxu0 %v3138_v44 }
 0xf8f   :  { %2689 = vmatprep.subr.bf16.mxu1 %v2974_v3 }
 0xf91   :  { %1647 = vmatpush1.bf16.msra.mxu0 %v3146_v50 }
 0xf92   :  { %1822 = vmatprep.subr.bf16.mxu0 %v3393_v31 }
0x1053   :  { %v1404_v43 = vpop.f32.mrb[32].mxu0 }
0x1054   :  { %v1507_v33 = vadd.f32 %v1404_v43, %v3175_v32  ;;  %v1406_v8 = vpop.f32.mrb[33].mxu0 }
0x1055   :  { %v1408_v51 = vpop.f32.mrb[34].mxu0 }
0x1056   :  { %2864 = vtanh.f32 %v1507_v33  ;;  %v1409_v23 = vpop.f32.mrb[35].mxu0  ;;  %v2546_v4 = vmul.f32 -1.442695, %v1507_v33 }
0x105c   :  { %v1452_v52 = vpop.f32.mrb[40].mxu1 }
0x105d   :  { %v1508_v44 = vadd.f32 %v1452_v52, %v1406_v8  ;;  %v1454_v36 = vpop.f32.mrb[41].mxu1 }
0x105e   :  { %v1456_v28 = vpop.f32.mrb[42].mxu1 }
0x105f   :  { %v1509_v50 = vadd.f32 %v3190_v58, %v1508_v44  ;;  %v1457_v53 = vpop.f32.mrb[43].mxu1  ;;  %v1500_v54 = vpop.f32.mrb[36].mxu0 }
0x1060   :  { %v2865_v55 = vpop.eup %2864  ;;  %v1510_v56 = vadd.f32 %v1500_v54, %v1454_v36  ;;  %v2687_v60 = vpop.f32.mrb[37].mxu0  ;;  %v3440_v53 = vld [vmem:[%s3671_s2 + $0x50] ss:$8 sps:$4 sm:$0xff]   ;;  %v3446_v54 = vld [vmem:[%s3671_s2 + $0x24] ss:$8 sps:$4 sm:$0xff]  }
0x1061   :  { %2866 = vtanh.f32 %v1509_v50  ;;  %v1503_v61 = vpop.f32.mrb[38].mxu0  ;;  %1539 = vrot.lane.b32.xlu0 %v2865_v55, %s2978_s20  ;;  %v2547_v5 = vmul.f32 -1.442695, %v1509_v50  ;;  %v3431_v50 = vld [vmem:[%s3671_s2 + $0x40] ss:$8 sps:$4 sm:$0xff]  }
0x1062   :  { %v1511_v32 = vadd.f32 %v3224_v57, %v1510_v56  ;;  %v2688_v62 = vpop.f32.mrb[39].mxu0  ;;  %v3457_v60 = vld [vmem:[%s3671_s2 + $0x20] ss:$8 sps:$4 sm:$0xff]   ;;  %v3465_v61 = vld [vmem:[%s3671_s2 + $0x34] ss:$8 sps:$4 sm:$0xff]  }
0x1064   :  { %2868 = vtanh.f32 %v1511_v32  ;;  %v2548_v41 = vmul.f32 -1.442695, %v1511_v32  ;;  %v3472_v32 = vld [vmem:[%s3671_s2 + $0x30] ss:$8 sps:$4 sm:$0xff]  }
0x1065   :  { %2870 = vpow2.f32 %v2546_v4 }
0x1066   :  { %2872 = vpow2.f32 %v2547_v5 }
0x1067   :  { %2874 = vpow2.f32 %v2548_v41 }
0x106b   :  { %v2867_v9 = vpop.eup %2866 }
0x106c   :  { %1541 = vrot.lane.b32.xlu1 %v2867_v9, %s2978_s20 }
0x106e   :  { %v2869_v1 = vpop.eup %2868 }
0x106f   :  { %1543 = vrot.lane.b32.xlu0 %v2869_v1, %s2978_s20  ;;  %v2871_v6 = vpop.eup %2870 }
0x1070   :  { %v1521_v7 = vadd.f32 1.0, %v2871_v6  ;;  %v2873_v47 = vpop.eup %2872 }
0x1071   :  { %v2875_v10 = vpop.eup %2874  ;;  %v1522_v11 = vadd.f32 1.0, %v2873_v47 }
0x1072   :  { %2876 = vrcp.f32 %v1521_v7  ;;  %v1523_v12 = vadd.f32 1.0, %v2875_v10 }
0x1073   :  { %2878 = vrcp.f32 %v1522_v11 }
0x1074   :  { %2880 = vrcp.f32 %v1523_v12 }
0x107c   :  { %v2877_v49 = vpop.eup %2876 }
0x107d   :  { %v2879_v25 = vpop.eup %2878  ;;  %v1533_v34 = vmul.f32 %v2877_v49, %v3336_v14 }
0x107e   :  { %v2881_v63 = vpop.eup %2880  ;;  %v1534_v37 = vmul.f32 %v2879_v25, %v3340_v22 }
0x107f   :  { %v1535_v42 = vmul.f32 %v2881_v63, %v3344_v13 }
0x10d3   :  { %v1540_v15 = vpop.permute.xlu0 %1539 }
0x10d4   :  { %v1548_v18 = vmul.f32 %v2877_v49, %v1540_v15 }
0x10d6   :  { %1554 = vrot.lane.b32.xlu1 %v1548_v18, %s2977_s9 }
0x10de   :  { %v1542_v30 = vpop.permute.xlu1 %1541 }
0x10df   :  { %v1549_v17 = vmul.f32 %v2879_v25, %v1542_v30 }
0x10e1   :  { %1556 = vrot.lane.b32.xlu0 %v1549_v17, %s2977_s9  ;;  %v1544_v19 = vpop.permute.xlu0 %1543 }
0x10e2   :  { %v1550_v2 = vmul.f32 %v2881_v63, %v1544_v19 }
0x10e4   :  { %1558 = vrot.lane.b32.xlu1 %v1550_v2, %s2977_s9 }
0x1148   :  { %v1555_v35 = vpop.permute.xlu1 %1554 }
0x1149   :  { %v3406_v0 = vadd.f32 %v1555_v35, %v1533_v34 }
0x114b   :  { %2882 = vtanh.f32 %v3406_v0 }
0x1153   :  { %v1557_v38 = vpop.permute.xlu0 %1556 }
0x1154   :  { %v3410_v39 = vadd.f32 %v1557_v38, %v1534_v37 }
0x1155   :  { %v2883_v20 = vpop.eup %2882 }
0x1156   :  { %2884 = vtanh.f32 %v3410_v39  ;;  %v1559_v45 = vpop.permute.xlu1 %1558  ;;  %1572 = vrot.lane.b32.xlu0 %v2883_v20, %s2978_s20 }
0x1157   :  { %v3415_v29 = vadd.f32 %v1559_v45, %v1535_v42 }
0x1159   :  { %2886 = vtanh.f32 %v3415_v29 }
0x1160   :  { %v2885_v14 = vpop.eup %2884 }
0x1161   :  { %1574 = vrot.lane.b32.xlu1 %v2885_v14, %s2978_s20 }
0x1163   :  { %v2887_v43 = vpop.eup %2886 }
0x1164   :  { %1576 = vrot.lane.b32.xlu0 %v2887_v43, %s2978_s20 }
0x11c8   :  { %v1573_v22 = vpop.permute.xlu0 %1572 }
0x11c9   :  { %v1581_v33 = vmul.f32 %v2877_v49, %v1573_v22 }
0x11cb   :  { %v1589_v8 = vpack.c.bf16 %v1581_v33, %v1581_v33 }
0x11cd   :  { %1591 = vrot.lane.b32.xlu1 %v1589_v8, %s2977_s9 }
0x11d3   :  { %v1575_v13 = vpop.permute.xlu1 %1574 }
0x11d4   :  { %v1582_v51 = vmul.f32 %v2879_v25, %v1575_v13 }
0x11d6   :  { %v1637_v23 = vpack.c.bf16 %v1582_v51, %v1582_v51  ;;  %v1577_v52 = vpop.permute.xlu0 %1576 }
0x11d7   :  { %v3421_v44 = vmul.f32 %v2881_v63, %v1577_v52 }
0x11d8   :  { %1639 = vrot.lane.b32.xlu0 %v1637_v23, %s2977_s9 }
0x11d9   :  { %v1685_v36 = vpack.c.bf16 %v3421_v44, %v3421_v44 }
0x11db   :  { %1687 = vrot.lane.b32.xlu1 %v1685_v36, %s2977_s9 }
0x123f   :  { %v1592_v28 = vpop.permute.xlu1 %1591 }
0x1240   :  { %2549 = vmatmul.mubr.msk.bf16.vlgmr.msra.gmra.mrb[44].mxu1 %vm325_vm3, %v1592_v28 }
0x1241   :  { %2690 = vmatpush3.bf16.msra.mxu1 %v3431_v50  ;;  %2693 = vmatprep.mubr.msk.bf16.mxu1 %vm2973_vm0, %v2974_v3 }
0x1242   :  { %2691 = vmatprep.subr.bf16.mxu1 %v2974_v3 }
0x1245   :  { %2692 = vmatpush3.bf16.msra.mxu1 %v3440_v53 }
0x1246   :  { %1870 = vmatprep.subr.bf16.mxu1 %v3446_v54 }
0x124a   :  { %v1640_v55 = vpop.permute.xlu0 %1639 }
0x124b   :  { %2550 = vmatmul.mubr.msk.bf16.vlgmr.msra.gmra.mrb[40].mxu0 %vm325_vm3, %v1640_v55 }
0x124c   :  { %1823 = vmatpush1.bf16.msra.mxu0 %v3368_v46  ;;  %1854 = vmatprep.mubr.bf16.mxu0 %v2976_v24 }
0x124d   :  { %v1688_v56 = vpop.permute.xlu1 %1687  ;;  %1824 = vmatprep.subr.bf16.mxu0 %v3375_v48 }
0x124e   :  { %2694 = vmatmul.mubr.msk.bf16.vlgmr.msra.gmra.mrb[48].mxu1 %vm325_vm3, %v1688_v56 }
0x124f   :  { %1871 = vmatpush1.bf16.msra.mxu1 %v3457_v60  ;;  %1902 = vmatprep.mubr.bf16.mxu1 %v2976_v24 }
0x1250   :  { %1825 = vmatpush1.bf16.msra.mxu0 %v3384_v27  ;;  %1872 = vmatprep.subr.bf16.mxu1 %v3465_v61 }
0x1251   :  { %2697 = vmatprep.subr.bf16.mxu0 %v2974_v3 }
0x1253   :  { %1873 = vmatpush1.bf16.msra.mxu1 %v3472_v32 }
0x1254   :  { %2048 = vmatprep.subr.bf16.mxu1 %v3393_v31 }
0x1313   :  { %v1630_v62 = vpop.f32.mrb[44].mxu1 }
0x1314   :  { %v1733_v9 = vadd.f32 %v1630_v62, %v3169_v21  ;;  %v1632_v1 = vpop.f32.mrb[45].mxu1 }
0x1315   :  { %v1634_v4 = vpop.f32.mrb[46].mxu1 }
0x1316   :  { %2888 = vtanh.f32 %v1733_v9  ;;  %v1635_v5 = vpop.f32.mrb[47].mxu1  ;;  %v2552_v63 = vmul.f32 -1.442695, %v1733_v9 }
0x131e   :  { %v1678_v6 = vpop.f32.mrb[40].mxu0 }
0x131f   :  { %v1734_v41 = vadd.f32 %v1678_v6, %v1632_v1  ;;  %v1680_v7 = vpop.f32.mrb[41].mxu0 }
0x1320   :  { %v2889_v47 = vpop.eup %2888  ;;  %v1682_v10 = vpop.f32.mrb[42].mxu0 }
0x1321   :  { %v1735_v11 = vadd.f32 %v3190_v58, %v1734_v41  ;;  %1765 = vrot.lane.b32.xlu0 %v2889_v47, %s2978_s20  ;;  %v1683_v49 = vpop.f32.mrb[43].mxu0  ;;  %v1726_v12 = vpop.f32.mrb[48].mxu1 }
0x1322   :  { %v1736_v15 = vadd.f32 %v1726_v12, %v1680_v7  ;;  %v2695_v31 = vpop.f32.mrb[49].mxu1 }
0x1323   :  { %2890 = vtanh.f32 %v1735_v11  ;;  %v1729_v18 = vpop.f32.mrb[50].mxu1  ;;  %v2553_v19 = vmul.f32 -1.442695, %v1735_v11 }
0x1324   :  { %v1737_v21 = vadd.f32 %v3224_v57, %v1736_v15  ;;  %v2696_v25 = vpop.f32.mrb[51].mxu1 }
0x1326   :  { %2892 = vtanh.f32 %v1737_v21  ;;  %v2554_v34 = vmul.f32 -1.442695, %v1737_v21 }
0x1327   :  { %2894 = vpow2.f32 %v2552_v63 }
0x1328   :  { %2896 = vpow2.f32 %v2553_v19 }
0x132d   :  { %v2891_v30 = vpop.eup %2890 }
0x132e   :  { %1767 = vrot.lane.b32.xlu1 %v2891_v30, %s2978_s20 }
0x1330   :  { %v2893_v17 = vpop.eup %2892 }
0x1331   :  { %1769 = vrot.lane.b32.xlu0 %v2893_v17, %s2978_s20  ;;  %v2895_v58 = vpop.eup %2894 }
0x1332   :  { %v1747_v2 = vadd.f32 1.0, %v2895_v58  ;;  %v2897_v35 = vpop.eup %2896  ;;  %v3531_v58 = vld [vmem:[%s3672_s6 + $0x1] ss:$0 sm:$0xff] }
0x1333   :  { %v1748_v57 = vadd.f32 1.0, %v2897_v35 }
0x1334   :  { %2898 = vrcp.f32 %v1747_v2 }
0x1335   :  { %2900 = vpow2.f32 %v2554_v34 }
0x1336   :  { %2902 = vrcp.f32 %v1748_v57 }
0x133e   :  { %v2899_v37 = vpop.eup %2898 }
0x133f   :  { %v2901_v38 = vpop.eup %2900  ;;  %v1759_v51 = vmul.f32 %v2899_v37, %v3406_v0 }
0x1340   :  { %v1749_v45 = vadd.f32 1.0, %v2901_v38  ;;  %v2903_v14 = vpop.eup %2902 }
0x1341   :  { %v1760_v36 = vmul.f32 %v2903_v14, %v3410_v39 }
0x1342   :  { %2904 = vrcp.f32 %v1749_v45 }
0x134c   :  { %v2905_v33 = vpop.eup %2904 }
0x134d   :  { %v1761_v62 = vmul.f32 %v2905_v33, %v3415_v29 }
0x1393   :  { %v1766_v20 = vpop.permute.xlu0 %1765 }
0x1394   :  { %v1774_v42 = vmul.f32 %v2899_v37, %v1766_v20 }
0x1396   :  { %1780 = vrot.lane.b32.xlu1 %v1774_v42, %s2977_s9 }
0x13a0   :  { %v1768_v43 = vpop.permute.xlu1 %1767 }
0x13a1   :  { %v1775_v22 = vmul.f32 %v2903_v14, %v1768_v43 }
0x13a3   :  { %1782 = vrot.lane.b32.xlu0 %v1775_v22, %s2977_s9  ;;  %v1770_v8 = vpop.permute.xlu0 %1769 }
0x13a4   :  { %v1776_v13 = vmul.f32 %v2905_v33, %v1770_v8 }
0x13a6   :  { %1784 = vrot.lane.b32.xlu1 %v1776_v13, %s2977_s9 }
0x1408   :  { %v1781_v23 = vpop.permute.xlu1 %1780 }
0x1409   :  { %v3486_v52 = vadd.f32 %v1781_v23, %v1759_v51 }
0x140b   :  { %2906 = vtanh.f32 %v3486_v52 }
0x1415   :  { %v2907_v28 = vpop.eup %2906  ;;  %v1783_v55 = vpop.permute.xlu0 %1782 }
0x1416   :  { %v3490_v56 = vadd.f32 %v1783_v55, %v1760_v36  ;;  %1798 = vrot.lane.b32.xlu0 %v2907_v28, %s2978_s20 }
0x1418   :  { %2908 = vtanh.f32 %v3490_v56  ;;  %v1785_v9 = vpop.permute.xlu1 %1784 }
0x1419   :  { %v3495_v1 = vadd.f32 %v1785_v9, %v1761_v62 }
0x141b   :  { %2910 = vtanh.f32 %v3495_v1 }
0x1422   :  { %v2909_v0 = vpop.eup %2908 }
0x1423   :  { %1800 = vrot.lane.b32.xlu1 %v2909_v0, %s2978_s20 }
0x1425   :  { %v2911_v4 = vpop.eup %2910 }
0x1426   :  { %1802 = vrot.lane.b32.xlu0 %v2911_v4, %s2978_s20 }
0x1488   :  { %v1799_v39 = vpop.permute.xlu0 %1798 }
0x1489   :  { %v1807_v5 = vmul.f32 %v2899_v37, %v1799_v39  ;;  %v3537_v37 = vld [vmem:[%s3672_s6 + $0x2] ss:$0 sm:$0xff] }
0x148b   :  { %v1815_v6 = vpack.c.bf16 %v1807_v5, %v1807_v5 }
0x148d   :  { %1817 = vrot.lane.b32.xlu1 %v1815_v6, %s2977_s9 }
0x1495   :  { %v1801_v41 = vpop.permute.xlu1 %1800 }
0x1496   :  { %v1808_v7 = vmul.f32 %v2903_v14, %v1801_v41 }
0x1498   :  { %v1863_v47 = vpack.c.bf16 %v1808_v7, %v1808_v7  ;;  %v1803_v29 = vpop.permute.xlu0 %1802 }
0x1499   :  { %v3501_v10 = vmul.f32 %v2905_v33, %v1803_v29 }
0x149a   :  { %1865 = vrot.lane.b32.xlu0 %v1863_v47, %s2977_s9 }
0x149b   :  { %v1911_v11 = vpack.c.bf16 %v3501_v10, %v3501_v10 }
0x149d   :  { %1913 = vrot.lane.b32.xlu1 %v1911_v11, %s2977_s9 }
0x14ff   :  { %v1818_v49 = vpop.permute.xlu1 %1817 }
0x1500   :  { %2555 = vmatmul.mubr.msk.bf16.vlgmr.msra.gmra.mrb[44].mxu0 %vm325_vm3, %v1818_v49 }
0x1501   :  { %2698 = vmatpush3.bf16.msra.mxu0 %v3431_v50  ;;  %2701 = vmatprep.mubr.msk.bf16.mxu0 %vm2973_vm0, %v2974_v3 }
0x1502   :  { %2699 = vmatprep.subr.bf16.mxu0 %v2974_v3 }
0x1505   :  { %2700 = vmatpush3.bf16.msra.mxu0 %v3440_v53 }
0x1506   :  { %2095 = vmatprep.subr.bf16.mxu0 %v3446_v54 }
0x150c   :  { %v1866_v12 = vpop.permute.xlu0 %1865 }
0x150d   :  { %2556 = vmatmul.mubr.msk.bf16.vlgmr.msra.gmra.mrb[52].mxu1 %vm325_vm3, %v1866_v12 }
0x150e   :  { %2049 = vmatpush1.bf16.msra.mxu1 %v3368_v46  ;;  %2080 = vmatprep.mubr.bf16.mxu1 %v2976_v24 }
0x150f   :  { %2050 = vmatprep.subr.bf16.mxu1 %v3375_v48  ;;  %v1914_v15 = vpop.permute.xlu1 %1913 }
0x1510   :  { %2702 = vmatmul.mubr.msk.bf16.vlgmr.msra.gmra.mrb[48].mxu0 %vm325_vm3, %v1914_v15 }
0x1511   :  { %2096 = vmatpush1.bf16.msra.mxu0 %v3457_v60  ;;  %2127 = vmatprep.mubr.bf16.mxu0 %v2976_v24 }
0x1512   :  { %2051 = vmatpush1.bf16.msra.mxu1 %v3384_v27  ;;  %2097 = vmatprep.subr.bf16.mxu0 %v3465_v61 }
0x1513   :  { %2705 = vmatprep.subr.bf16.mxu1 %v2974_v3 }
0x1515   :  { %2098 = vmatpush1.bf16.msra.mxu0 %v3472_v32 }
0x1516   :  { %2247 = vmatprep.subr.bf16.mxu0 %v3446_v54 }
0x15d3   :  { %v1856_v46 = vpop.f32.mrb[44].mxu0 }
0x15d4   :  { %v1959_v48 = vadd.f32 %v1856_v46, %v3173_v26  ;;  %v1858_v31 = vpop.f32.mrb[45].mxu0 }
0x15d5   :  { %v1860_v18 = vpop.f32.mrb[46].mxu0 }
0x15d6   :  { %2912 = vtanh.f32 %v1959_v48  ;;  %v1861_v21 = vpop.f32.mrb[47].mxu0  ;;  %v2558_v45 = vmul.f32 -1.442695, %v1959_v48 }
0x15e0   :  { %v2913_v27 = vpop.eup %2912  ;;  %v1904_v25 = vpop.f32.mrb[52].mxu1 }
0x15e1   :  { %v1960_v30 = vadd.f32 %v1904_v25, %v1858_v31  ;;  %1991 = vrot.lane.b32.xlu0 %v2913_v27, %s2978_s20  ;;  %v1906_v17 = vpop.f32.mrb[53].mxu1 }
0x15e2   :  { %v1908_v63 = vpop.f32.mrb[54].mxu1 }
0x15e3   :  { %v1961_v54 = vadd.f32 %v3531_v58, %v1960_v30  ;;  %v1909_v19 = vpop.f32.mrb[55].mxu1  ;;  %v1952_v26 = vpop.f32.mrb[48].mxu0 }
0x15e4   :  { %v1962_v2 = vadd.f32 %v1952_v26, %v1906_v17  ;;  %v2703_v34 = vpop.f32.mrb[49].mxu0 }
0x15e5   :  { %2914 = vtanh.f32 %v1961_v54  ;;  %v1955_v35 = vpop.f32.mrb[50].mxu0  ;;  %v2559_v43 = vmul.f32 -1.442695, %v1961_v54 }
0x15e6   :  { %v1963_v57 = vadd.f32 %v3537_v37, %v1962_v2  ;;  %v2704_v38 = vpop.f32.mrb[51].mxu0 }
0x15e8   :  { %2916 = vtanh.f32 %v1963_v57  ;;  %v2560_v33 = vmul.f32 -1.442695, %v1963_v57 }
0x15e9   :  { %2918 = vpow2.f32 %v2558_v45 }
0x15ea   :  { %2920 = vpow2.f32 %v2559_v43 }
0x15ef   :  { %v2915_v20 = vpop.eup %2914 }
0x15f0   :  { %1993 = vrot.lane.b32.xlu1 %v2915_v20, %s2978_s20 }
0x15f2   :  { %v2917_v42 = vpop.eup %2916 }
0x15f3   :  { %1995 = vrot.lane.b32.xlu0 %v2917_v42, %s2978_s20  ;;  %v2919_v14 = vpop.eup %2918 }
0x15f4   :  { %v1973_v22 = vadd.f32 1.0, %v2919_v14  ;;  %v2921_v8 = vpop.eup %2920 }
0x15f5   :  { %v1974_v28 = vadd.f32 1.0, %v2921_v8 }
0x15f6   :  { %2922 = vrcp.f32 %v1973_v22 }
0x15f7   :  { %2924 = vpow2.f32 %v2560_v33 }
0x15f8   :  { %2926 = vrcp.f32 %v1974_v28 }
0x1600   :  { %v2923_v13 = vpop.eup %2922 }
0x1601   :  { %v2925_v36 = vpop.eup %2924  ;;  %v1985_v6 = vmul.f32 %v2923_v13, %v3486_v52 }
0x1602   :  { %v1975_v55 = vadd.f32 1.0, %v2925_v36  ;;  %v2927_v62 = vpop.eup %2926 }
0x1603   :  { %v1986_v29 = vmul.f32 %v2927_v62, %v3490_v56 }
0x1604   :  { %2928 = vrcp.f32 %v1975_v55 }
0x160e   :  { %v2929_v4 = vpop.eup %2928 }
0x160f   :  { %v1987_v12 = vmul.f32 %v2929_v4, %v3495_v1 }
0x1653   :  { %v1992_v51 = vpop.permute.xlu0 %1991 }
0x1654   :  { %v2000_v23 = vmul.f32 %v2923_v13, %v1992_v51 }
0x1656   :  { %2006 = vrot.lane.b32.xlu1 %v2000_v23, %s2977_s9 }
0x1662   :  { %v1994_v9 = vpop.permute.xlu1 %1993 }
0x1663   :  { %v2001_v0 = vmul.f32 %v2927_v62, %v1994_v9 }
0x1665   :  { %2008 = vrot.lane.b32.xlu0 %v2001_v0, %s2977_s9  ;;  %v1996_v39 = vpop.permute.xlu0 %1995 }
0x1666   :  { %v2002_v5 = vmul.f32 %v2929_v4, %v1996_v39 }
0x1668   :  { %2010 = vrot.lane.b32.xlu1 %v2002_v5, %s2977_s9 }
0x16c8   :  { %v2007_v41 = vpop.permute.xlu1 %2006 }
0x16c9   :  { %v2015_v7 = vadd.f32 %v2007_v41, %v1985_v6 }
0x16cb   :  { %2930 = vtanh.f32 %v2015_v7 }
0x16d5   :  { %v2931_v47 = vpop.eup %2930 }
0x16d6   :  { %2024 = vrot.lane.b32.xlu0 %v2931_v47, %s2978_s20 }
0x16d7   :  { %v2009_v11 = vpop.permute.xlu0 %2008 }
0x16d8   :  { %v3548_v49 = vadd.f32 %v2009_v11, %v1986_v29 }
0x16da   :  { %2932 = vtanh.f32 %v3548_v49  ;;  %v2011_v15 = vpop.permute.xlu1 %2010 }
0x16db   :  { %v3552_v46 = vadd.f32 %v2011_v15, %v1987_v12 }
0x16dd   :  { %2934 = vtanh.f32 %v3552_v46 }
0x16e4   :  { %v2933_v52 = vpop.eup %2932 }
0x16e5   :  { %2026 = vrot.lane.b32.xlu1 %v2933_v52, %s2978_s20 }
0x16e7   :  { %v2935_v48 = vpop.eup %2934 }
0x16e8   :  { %2028 = vrot.lane.b32.xlu0 %v2935_v48, %s2978_s20 }
0x1748   :  { %v2025_v31 = vpop.permute.xlu0 %2024 }
0x1749   :  { %v2033_v56 = vmul.f32 %v2923_v13, %v2025_v31 }
0x174b   :  { %v2041_v18 = vpack.c.bf16 %v2033_v56, %v2033_v56 }
0x174d   :  { %2043 = vrot.lane.b32.xlu1 %v2041_v18, %s2977_s9 }
0x1757   :  { %v2027_v21 = vpop.permute.xlu1 %2026 }
0x1758   :  { %v2034_v1 = vmul.f32 %v2927_v62, %v2027_v21 }
0x175a   :  { %v2088_v27 = vpack.c.bf16 %v2034_v1, %v2034_v1  ;;  %v2029_v25 = vpop.permute.xlu0 %2028 }
0x175b   :  { %v3558_v30 = vmul.f32 %v2929_v4, %v2029_v25 }
0x175c   :  { %2090 = vrot.lane.b32.xlu0 %v2088_v27, %s2977_s9 }
0x175d   :  { %v2136_v17 = vpack.c.bf16 %v3558_v30, %v3558_v30 }
0x175f   :  { %2138 = vrot.lane.b32.xlu1 %v2136_v17, %s2977_s9 }
0x17bf   :  { %v2044_v63 = vpop.permute.xlu1 %2043 }
0x17c0   :  { %2561 = vmatmul.mubr.msk.bf16.vlgmr.msra.gmra.mrb[56].mxu1 %vm325_vm3, %v2044_v63 }
0x17c1   :  { %2706 = vmatpush3.bf16.msra.mxu1 %v3431_v50  ;;  %2709 = vmatprep.mubr.msk.bf16.mxu1 %vm2973_vm0, %v2974_v3 }
0x17c2   :  { %2707 = vmatprep.subr.bf16.mxu1 %v2974_v3 }
0x17c5   :  { %2708 = vmatpush3.bf16.msra.mxu1 %v3440_v53 }
0x17c6   :  { %2713 = vmatprep.subr.bf16.mxu1 %v2974_v3 }
0x17ce   :  { %v2091_v54 = vpop.permute.xlu0 %2090 }
0x17cf   :  { %2562 = vmatmul.mubr.msk.bf16.vlgmr.msra.gmra.mrb[52].mxu0 %vm325_vm3, %v2091_v54 }
0x17d0   :  { %2248 = vmatpush1.bf16.msra.mxu0 %v3457_v60  ;;  %2279 = vmatprep.mubr.bf16.mxu0 %v2976_v24 }
0x17d1   :  { %v2139_v19 = vpop.permute.xlu1 %2138  ;;  %2249 = vmatprep.subr.bf16.mxu0 %v3465_v61 }
0x17d2   :  { %2710 = vmatmul.mubr.msk.bf16.vlgmr.msra.gmra.mrb[60].mxu1 %vm325_vm3, %v2139_v19 }
0x17d3   :  { %2714 = vmatpush3.bf16.msra.mxu1 %v3431_v50  ;;  %2717 = vmatprep.mubr.msk.bf16.mxu1 %vm2973_vm0, %v2974_v3 }
0x17d4   :  { %2250 = vmatpush1.bf16.msra.mxu0 %v3472_v32  ;;  %2715 = vmatprep.subr.bf16.mxu1 %v2974_v3 }
0x17d7   :  { %2716 = vmatpush3.bf16.msra.mxu1 %v3440_v53 }
0x1893   :  { %v2082_v26 = vpop.f32.mrb[56].mxu1 }
0x1894   :  { %v2083_v60 = vpop.f32.mrb[57].mxu1 }
0x1895   :  { %v2085_v2 = vpop.f32.mrb[58].mxu1 }
0x1896   :  { %v2086_v24 = vpop.f32.mrb[59].mxu1 }
0x18a2   :  { %v2129_v34 = vpop.f32.mrb[52].mxu0 }
0x18a3   :  { %v2183_v35 = vadd.f32 %v2129_v34, %v2083_v60  ;;  %v2131_v61 = vpop.f32.mrb[53].mxu0 }
0x18a4   :  { %v2133_v57 = vpop.f32.mrb[54].mxu0 }
0x18a5   :  { %v2184_v38 = vadd.f32 %v3531_v58, %v2183_v35  ;;  %v2134_v50 = vpop.f32.mrb[55].mxu0  ;;  %v2177_v20 = vpop.f32.mrb[60].mxu1 }
0x18a6   :  { %v2185_v42 = vadd.f32 %v2177_v20, %v2131_v61  ;;  %v2711_v45 = vpop.f32.mrb[61].mxu1  ;;  %v2767_v20 = vld [vmem:[%s3673_s5 + $0x8] sm:$0xff]  }
0x18a7   :  { %2936 = vtanh.f32 %v2184_v38  ;;  %v2180_v32 = vpop.f32.mrb[62].mxu1  ;;  %v2564_v22 = vmul.f32 -1.442695, %v2184_v38 }
0x18a8   :  { %v2186_v3 = vadd.f32 %v3537_v37, %v2185_v42  ;;  %v2712_v14 = vpop.f32.mrb[63].mxu1 }
0x18aa   :  { %2938 = vtanh.f32 %v2186_v3  ;;  %v2565_v33 = vmul.f32 -1.442695, %v2186_v3 }
0x18ab   :  { %2940 = vpow2.f32 %v2564_v22 }
0x18ac   :  { %2942 = vpow2.f32 %v2565_v33 }
0x18b1   :  { %v2937_v53 = vpop.eup %2936 }
0x18b2   :  { %2205 = vrot.lane.b32.xlu0 %v2937_v53, %s2978_s20 }
0x18b4   :  { %v2939_v43 = vpop.eup %2938 }
0x18b5   :  { %2207 = vrot.lane.b32.xlu1 %v2939_v43, %s2978_s20  ;;  %v2941_v58 = vpop.eup %2940 }
0x18b6   :  { %v2943_v8 = vpop.eup %2942  ;;  %v2193_v13 = vadd.f32 1.0, %v2941_v58 }
0x18b7   :  { %v2194_v51 = vadd.f32 1.0, %v2943_v8 }
0x18b8   :  { %2944 = vrcp.f32 %v2193_v13 }
0x18b9   :  { %2946 = vrcp.f32 %v2194_v51 }
0x18c2   :  { %v2945_v23 = vpop.eup %2944 }
0x18c3   :  { %v2947_v55 = vpop.eup %2946  ;;  %v2201_v0 = vmul.f32 %v2945_v23, %v3548_v49 }
0x18c4   :  { %v2202_v5 = vmul.f32 %v2947_v55, %v3552_v46 }
0x1924   :  { %v2206_v36 = vpop.permute.xlu0 %2205 }
0x1925   :  { %v2211_v28 = vmul.f32 %v2945_v23, %v2206_v36 }
0x1927   :  { %2215 = vrot.lane.b32.xlu0 %v2211_v28, %s2977_s9  ;;  %v2208_v62 = vpop.permute.xlu1 %2207 }
0x1928   :  { %v2212_v9 = vmul.f32 %v2947_v55, %v2208_v62 }
0x192a   :  { %2217 = vrot.lane.b32.xlu1 %v2212_v9, %s2977_s9 }
0x1999   :  { %v2216_v4 = vpop.permute.xlu0 %2215 }
0x199a   :  { %v2221_v39 = vadd.f32 %v2216_v4, %v2201_v0 }
0x199c   :  { %2948 = vtanh.f32 %v2221_v39  ;;  %v2218_v6 = vpop.permute.xlu1 %2217 }
0x199d   :  { %v2222_v41 = vadd.f32 %v2218_v6, %v2202_v5 }
0x199f   :  { %2950 = vtanh.f32 %v2222_v41 }
0x19a6   :  { %v2949_v7 = vpop.eup %2948 }
0x19a7   :  { %2227 = vrot.lane.b32.xlu0 %v2949_v7, %s2978_s20 }
0x19a9   :  { %v2951_v47 = vpop.eup %2950 }
0x19aa   :  { %2229 = vrot.lane.b32.xlu1 %v2951_v47, %s2978_s20 }
0x1a19   :  { %v2228_v29 = vpop.permute.xlu0 %2227 }
0x1a1a   :  { %v2233_v11 = vmul.f32 %v2945_v23, %v2228_v29 }
0x1a1c   :  { %v2240_v12 = vpack.c.bf16 %v2233_v11, %v2233_v11  ;;  %v2230_v15 = vpop.permute.xlu1 %2229 }
0x1a1d   :  { %v2234_v52 = vmul.f32 %v2947_v55, %v2230_v15  ;;  %v2569_v55 = vld [vmem:[%s3672_s6 + $0x5] ss:$0 sm:$0xff] }
0x1a1e   :  { %2242 = vrot.lane.b32.xlu0 %v2240_v12, %s2977_s9 }
0x1a1f   :  { %v2287_v49 = vpack.c.bf16 %v2234_v52, %v2234_v52 }
0x1a21   :  { %2289 = vrot.lane.b32.xlu1 %v2287_v49, %s2977_s9 }
0x1a90   :  { %v2243_v46 = vpop.permute.xlu0 %2242 }
0x1a91   :  { %2566 = vmatmul.mubr.msk.bf16.vlgmr.msra.gmra.mrb[56].mxu0 %vm325_vm3, %v2243_v46 }
0x1a93   :  { %v2290_v48 = vpop.permute.xlu1 %2289 }
0x1a94   :  { %2718 = vmatmul.mubr.msk.bf16.vlgmr.msra.gmra.mrb[64].mxu1 %vm325_vm3, %v2290_v48 }
0x1b64   :  { %v2281_v31 = vpop.f32.mrb[56].mxu0 }
0x1b65   :  { %v2282_v56 = vpop.f32.mrb[57].mxu0 }
0x1b66   :  { %v2284_v18 = vpop.f32.mrb[58].mxu0 }
0x1b67   :  { %v2285_v21 = vpop.f32.mrb[59].mxu0  ;;  %v2328_v1 = vpop.f32.mrb[64].mxu1 }
0x1b68   :  { %v2334_v27 = vadd.f32 %v2328_v1, %v2282_v56  ;;  %v2719_v25 = vpop.f32.mrb[65].mxu1 }
0x1b69   :  { %v2331_v17 = vpop.f32.mrb[66].mxu1 }
0x1b6a   :  { %v2335_v63 = vadd.f32 %v3537_v37, %v2334_v27  ;;  %v2720_v54 = vpop.f32.mrb[67].mxu1 }
0x1b6c   :  { %2952 = vtanh.f32 %v2335_v63  ;;  %v2568_v26 = vmul.f32 -1.442695, %v2335_v63 }
0x1b6e   :  { %2954 = vpow2.f32 %v2568_v26 }
0x1b76   :  { %v2953_v19 = vpop.eup %2952 }
0x1b77   :  { %2345 = vrot.lane.b32.xlu0 %v2953_v19, %s2978_s20 }
0x1b78   :  { %v2955_v60 = vpop.eup %2954 }
0x1b79   :  { %v2339_v2 = vadd.f32 1.0, %v2955_v60 }
0x1b7b   :  { %2956 = vrcp.f32 %v2339_v2 }
0x1b85   :  { %v2957_v24 = vpop.eup %2956 }
0x1b86   :  { %v2343_v37 = vmul.f32 %v2957_v24, %v2222_v41 }
0x1be9   :  { %v2346_v34 = vpop.permute.xlu0 %2345 }
0x1bea   :  { %v2348_v35 = vmul.f32 %v2957_v24, %v2346_v34 }
0x1bec   :  { %2350 = vrot.lane.b32.xlu1 %v2348_v35, %s2977_s9 }
0x1bf0   :  { %907 = vrot.lane.b32.xlu1 %v3251_v59, %s2977_s9  ;;  %v2766_v59 = vld [vmem:[%s3673_s5] sm:$0xff]  }
0x1bf1   :  { %2721 = vmatprep.subr.bf16.mxu0 %v2766_v59 }
0x1bf2   :  { %2722 = vmatpush3.bf16.msra.mxu0 %v2766_v59 }
0x1bf3   :  { %2723 = vmatprep.subr.bf16.mxu0 %v2767_v20 }
0x1bf4   :  { %1359 = vrot.lane.b32.xlu1 %v3351_v40, %s2977_s9 }
0x1bf6   :  { %2724 = vmatpush3.bf16.msra.mxu0 %v2767_v20 }
0x1bf8   :  { %1811 = vrot.lane.b32.xlu1 %v3501_v10, %s2977_s9 }
0x1bfc   :  { %2236 = vrot.lane.b32.xlu1 %v2234_v52, %s2977_s9 }
0x1c5e   :  { %v2351_v61 = vpop.permute.xlu1 %2350 }
0x1c5f   :  { %v2353_v57 = vadd.f32 %v2351_v61, %v2343_v37 }
0x1c61   :  { %2958 = vtanh.f32 %v2353_v57 }
0x1c62   :  { %v908_v38 = vpop.permute.xlu1 %907 }
0x1c63   :  { %910 = vst.msk [vmem:[#allocation3] sm:$0xff] %vm325_vm3, %v908_v38 }
0x1c66   :  { %v1360_v50 = vpop.permute.xlu1 %1359 }
0x1c67   :  { %1362 = vst.msk [vmem:[#allocation3 + $0x10] sm:$0xff] %vm325_vm3, %v1360_v50 }
0x1c6a   :  { %v1812_v40 = vpop.permute.xlu1 %1811  ;;  %v2365_v43 = vld [vmem:[#allocation3] sm:$0xff] }
0x1c6b   :  { %v2959_v10 = vpop.eup %2958  ;;  %1814 = vst.msk [vmem:[#allocation3 + $0x20] sm:$0xff] %vm325_vm3, %v1812_v40 }
0x1c6c   :  { %2356 = vrot.lane.b32.xlu0 %v2959_v10, %s2978_s20 }
0x1c6e   :  { %v2237_v42 = vpop.permute.xlu1 %2236 }
0x1c6f   :  { %2239 = vst.msk [vmem:[#allocation3 + $0x30] sm:$0xff] %vm325_vm3, %v2237_v42 }
0x1c70   :  { %1133 = vrot.lane.b32.xlu0 %v3301_v16, %s2977_s9 }
0x1c72   :  { %v2369_v58 = vld [vmem:[#allocation3 + $0x20] sm:$0xff] }
0x1c74   :  { %1585 = vrot.lane.b32.xlu0 %v3421_v44, %s2977_s9  ;;  %v2367_v44 = vld [vmem:[#allocation3 + $0x10] sm:$0xff] }
0x1c76   :  { %v2371_v23 = vld [vmem:[#allocation3 + $0x30] sm:$0xff] }
0x1c78   :  { %2037 = vrot.lane.b32.xlu0 %v3558_v30, %s2977_s9 }
0x1cde   :  { %v2357_v45 = vpop.permute.xlu0 %2356 }
0x1cdf   :  { %v2359_v32 = vmul.f32 %v2957_v24, %v2357_v45 }
0x1ce1   :  { %2361 = vrot.lane.b32.xlu0 %v2359_v32, %s2977_s9 }
0x1ce2   :  { %v1134_v3 = vpop.permute.xlu0 %1133 }
0x1ce3   :  { %1136 = vst.msk [vmem:[#allocation3 + $0x8] sm:$0xff] %vm325_vm3, %v1134_v3 }
0x1ce6   :  { %v1586_v14 = vpop.permute.xlu0 %1585 }
0x1ce7   :  { %1588 = vst.msk [vmem:[#allocation3 + $0x18] sm:$0xff] %vm325_vm3, %v1586_v14 }
0x1cea   :  { %v2038_v53 = vpop.permute.xlu0 %2037  ;;  %v2366_v22 = vld [vmem:[#allocation3 + $0x8] sm:$0xff] }
0x1ceb   :  { %2040 = vst.msk [vmem:[#allocation3 + $0x28] sm:$0xff] %vm325_vm3, %v2038_v53  ;;  %v2373_v16 = vpack.c.bf16 %v2366_v22, %v2365_v43 }
0x1ced   :  { %2725 = vmatprep.mubr.msk.bf16.mxu0 %vm325_vm3, %v2373_v16 }
0x1cee   :  { %v2368_v30 = vld [vmem:[#allocation3 + $0x18] sm:$0xff] }
0x1cef   :  { %v2374_v33 = vpack.c.bf16 %v2368_v30, %v2367_v44 }
0x1cf1   :  { %2726 = vmatmul.mubr.msk.bf16.vlgmr.msra.gmra.mrb[60].mxu0 %vm325_vm3, %v2374_v33 }
0x1cf2   :  { %v2370_v8 = vld [vmem:[#allocation3 + $0x28] sm:$0xff] }
0x1cf3   :  { %v2375_v13 = vpack.c.bf16 %v2370_v8, %v2369_v58 }
0x1cf5   :  { %2729 = vmatprep.mubr.msk.bf16.mxu0 %vm325_vm3, %v2375_v13 }
0x1d53   :  { %v2362_v51 = vpop.permute.xlu0 %2361 }
0x1d54   :  { %2364 = vst.msk [vmem:[#allocation3 + $0x38] sm:$0xff] %vm325_vm3, %v2362_v51 }
0x1d5b   :  { %v2372_v36 = vld [vmem:[#allocation3 + $0x38] sm:$0xff] }
0x1d5c   :  { %v2376_v28 = vpack.c.bf16 %v2372_v36, %v2371_v23 }
0x1d5e   :  { %2730 = vmatmul.mubr.msk.bf16.gmra.mrb[64].mxu0 %vm325_vm3, %v2376_v28 }
0x1dc4   :  { %v2727_v62 = vpop.f32.mrb[60].mxu0 }
0x1dc5   :  { %v2452_v9 = vadd.f32 %v2727_v62, %v2569_v55  ;;  %v2443_v0 = vpop.f32.mrb[61].mxu0 }
0x1dc6   :  { %v2444_v4 = vadd.f32 %v2569_v55, %v2443_v0  ;;  %v2728_v39 = vpop.f32.mrb[62].mxu0 }
0x1dc7   :  { %2476 = vst.msk [vmem:[%s3674_s7 + $0x10] sm:$0xff] %vm325_vm3, %v2452_v9  ;;  %v2455_v5 = vadd.f32 %v2728_v39, %v2569_v55  ;;  %v2446_v6 = vpop.f32.mrb[63].mxu0 }
0x1dc8   :  { %2474 = vst.msk [vmem:[%s3674_s7] sm:$0xff] %vm325_vm3, %v2444_v4  ;;  %v2447_v41 = vadd.f32 %v2569_v55, %v2446_v6 }
0x1dc9   :  { %2477 = vst.msk [vmem:[%s3674_s7 + $0x18] sm:$0xff] %vm325_vm3, %v2455_v5 }
0x1dca   :  { %2475 = vst.msk [vmem:[%s3674_s7 + $0x8] sm:$0xff] %vm325_vm3, %v2447_v41 }
0x1e31   :  { %v2731_v7 = vpop.f32.mrb[64].mxu0 }
0x1e32   :  { %v2468_v47 = vadd.f32 %v2731_v7, %v2569_v55  ;;  %v2459_v29 = vpop.f32.mrb[65].mxu0 }
0x1e33   :  { %v2460_v11 = vadd.f32 %v2569_v55, %v2459_v29  ;;  %v2732_v12 = vpop.f32.mrb[66].mxu0 }
0x1e34   :  { %2480 = vst.msk [vmem:[%s3674_s7 + $0x30] sm:$0xff] %vm325_vm3, %v2468_v47  ;;  %v2471_v15 = vadd.f32 %v2732_v12, %v2569_v55  ;;  %v2462_v52 = vpop.f32.mrb[67].mxu0 }
0x1e35   :  { %2478 = vst.msk [vmem:[%s3674_s7 + $0x20] sm:$0xff] %vm325_vm3, %v2460_v11  ;;  %v2463_v49 = vadd.f32 %v2569_v55, %v2462_v52 }
0x1e36   :  { %2481 = vst.msk [vmem:[%s3674_s7 + $0x38] sm:$0xff] %vm325_vm3, %v2471_v15 }
0x1e37   :  { %2479 = vst.msk [vmem:[%s3674_s7 + $0x28] sm:$0xff] %vm325_vm3, %v2463_v49 }

</bundles_post_ra>
